<compile_context>
chip_gen: v7x
topology: tpu7x:2x2x1
jax: 0.10.0
libtpu: 0.0.40
codegen_flags: <defaults>
</compile_context>

<pallas_src>
import functools

import jax
import jax.numpy as jnp
from jax import lax
from jax.experimental import pallas as pl
from jax.experimental.pallas import tpu as pltpu


# ----------------------------------------------------------------------------------
# helpers
# ----------------------------------------------------------------------------------
def _vmem_limit_bytes():
    """Generation-aware VMEM budget (v5e/v6e: 128 MiB phys, v7x: 64 MiB per TC)."""
    cap = None
    try:
        cap = getattr(pltpu.get_tpu_info(), "vmem_capacity_bytes", None)
    except Exception:
        cap = None
    if not cap:
        cap = 64 * 1024 * 1024  # conservative fallback (v7x per-core VMEM)
    return int(min(100 * 1024 * 1024, (3 * cap) // 4))


def _pick_row_tile(n_batch, ho, wo, cout, vmem_limit):
    """Output rows per grid step: as big as the budget allows (amortize grid overhead)."""
    budget = max(vmem_limit // 6, 1 << 20)          # leave room for input slab / weights
    th = max(1, min(ho, budget // max(wo * cout * 4, 1)))
    if n_batch == 1 and ho > 1:                     # keep >=2 grid steps (v7x: 2 TCs)
        th = min(th, (ho + 1) // 2)
    return th


# ----------------------------------------------------------------------------------
# Pallas kernels
# ----------------------------------------------------------------------------------
def _fused_convt_kernel(x_ref, w_ref, g_ref, b_ref, y_ref, stats_ref, *,
                        k, th, wo, cin, cout, ho, ho_pad, apply_affine):
    """One (batch, row-tile) step of the transposed conv with fused im2col.

    x_ref:     (1, hp_pad, wp, cin)  padded/dilated NHWC slab for this batch element
    w_ref:     (k, k, cin, cout)     spatially flipped, weight-normalized filter
    g_ref/b_ref: (1, cout)           used only when apply_affine (initial=True)
    y_ref:     (1, th, wo, cout)     conv output tile
    stats_ref: (1, 1, 8, cout)       row 0: per-channel sum, row 1: sum of squares
    """
    h0 = pl.program_id(1) * th
    acc = jnp.zeros((th * wo, cout), jnp.float32)
    for dh in range(k):                       # fully unrolled k*k tap loop (no K grid axis)
        for dw in range(k):
            win = x_ref[0, pl.ds(h0 + dh, th), pl.ds(dw, wo), :]       # (th, wo, cin)
            acc += jnp.dot(win.reshape(th * wo, cin), w_ref[dh, dw],
                           preferred_element_type=jnp.float32)

    # per-channel partial statistics (exclude padded output rows, if any)
    vals = acc
    if ho_pad > ho:
        row = h0 + lax.broadcasted_iota(jnp.int32, (th * wo, 1), 0) // wo
        vals = jnp.where(row < ho, acc, 0.0)
    s1 = jnp.sum(vals, axis=0, keepdims=True)                          # (1, cout)
    s2 = jnp.sum(vals * vals, axis=0, keepdims=True)                   # (1, cout)
    stats_ref[0, 0] = jnp.concatenate(
        [s1, s2, jnp.zeros((6, cout), jnp.float32)], axis=0)

    if apply_affine:                           # initial=True: fuse scale/shift, skip epilogue
        acc = acc * g_ref[...] + b_ref[...]
    y_ref[0] = acc.reshape(th, wo, cout).astype(y_ref.dtype)


def _affine_kernel(y_ref, g_ref, b_ref, o_ref):
    # y_ref: (1, th, wo, cout), g_ref/b_ref: (1, cout) -- lane-dense epilogue
    o_ref[...] = (y_ref[...] * g_ref[...] + b_ref[...]).astype(o_ref.dtype)


# ----------------------------------------------------------------------------------
# pallas_call wrappers
# ----------------------------------------------------------------------------------
def _fused_conv_transpose(x_pad, w_knl, g_row, b_row, *, th, ho, wo, k,
                          apply_affine, y_dtype, vmem_limit):
    n, hp_pad, wp, cin = x_pad.shape
    cout = w_knl.shape[-1]
    ho_pad = hp_pad - (k - 1)
    assert wp == wo + k - 1 and ho_pad % th == 0
    n_h = ho_pad // th

    kernel = functools.partial(
        _fused_convt_kernel, k=k, th=th, wo=wo, cin=cin, cout=cout,
        ho=ho, ho_pad=ho_pad, apply_affine=apply_affine)

    cost = pl.CostEstimate(
        flops=2 * n * ho_pad * wo * k * k * cin * cout,
        transcendentals=0,
        bytes_accessed=(x_pad.size * x_pad.dtype.itemsize
                        + w_knl.size * w_knl.dtype.itemsize
                        + n * ho_pad * wo * cout * jnp.dtype(y_dtype).itemsize
                        + n * n_h * 8 * cout * 4))

    y, stats = pl.pallas_call(
        kernel,
        out_shape=(jax.ShapeDtypeStruct((n, ho_pad, wo, cout), y_dtype),
                   jax.ShapeDtypeStruct((n, n_h, 8, cout), jnp.float32)),
        grid_spec=pltpu.PrefetchScalarGridSpec(
            num_scalar_prefetch=0,
            grid=(n, n_h),
            in_specs=[
                # full padded slab per batch element: fetched once, reused across h tiles
                pl.BlockSpec((1, hp_pad, wp, cin), lambda bi, hi: (bi, 0, 0, 0)),
                pl.BlockSpec((k, k, cin, cout), lambda bi, hi: (0, 0, 0, 0)),
                pl.BlockSpec((1, cout), lambda bi, hi: (0, 0)),
                pl.BlockSpec((1, cout), lambda bi, hi: (0, 0)),
            ],
            out_specs=[
                pl.BlockSpec((1, th, wo, cout), lambda bi, hi: (bi, hi, 0, 0)),
                pl.BlockSpec((1, 1, 8, cout), lambda bi, hi: (bi, hi, 0, 0)),
            ],
        ),
        compiler_params=pltpu.CompilerParams(
            dimension_semantics=("parallel", "parallel"),
            vmem_limit_bytes=vmem_limit),
        cost_estimate=cost,
    )(x_pad, w_knl, g_row, b_row)
    return y, stats


def _affine_epilogue(y, g_row, b_row, out_dtype, *, th, vmem_limit):
    n, ho_pad, wo, cout = y.shape
    assert ho_pad % th == 0
    n_h = ho_pad // th
    return pl.pallas_call(
        _affine_kernel,
        out_shape=jax.ShapeDtypeStruct((n, ho_pad, wo, cout), out_dtype),
        grid_spec=pltpu.PrefetchScalarGridSpec(
            num_scalar_prefetch=0,
            grid=(n, n_h),
            in_specs=[
                pl.BlockSpec((1, th, wo, cout), lambda bi, hi: (bi, hi, 0, 0)),
                pl.BlockSpec((1, cout), lambda bi, hi: (0, 0)),
                pl.BlockSpec((1, cout), lambda bi, hi: (0, 0)),
            ],
            out_specs=pl.BlockSpec((1, th, wo, cout), lambda bi, hi: (bi, hi, 0, 0)),
        ),
        compiler_params=pltpu.CompilerParams(
            dimension_semantics=("parallel", "parallel"),
            vmem_limit_bytes=vmem_limit),
    )(y, g_row, b_row)


# ----------------------------------------------------------------------------------
# Forward of WeightNormConvTranspose2d
# ----------------------------------------------------------------------------------
def weight_norm_conv_transpose2d(x, V, g=None, b=None, *, stride=1, padding="SAME",
                                 init_scale=1.0, initial=False, compute_dtype=None,
                                 row_tile=None):
    """x: (N, Cin, H, W) NCHW.  V: (Cin, Cout, k, k) (PyTorch conv_transpose2d layout).

    Faithful to the PyTorch module: V is row-normalized like F.normalize(V.view(Cout,-1)),
    and when initial=False the affine g/b are recomputed every forward from the batch
    mean / unbiased variance of the conv output.  compute_dtype=jnp.bfloat16 uses bf16
    MXU operands with f32 accumulation (recommended on v6e/v7x; stats and the epilogue
    stay f32, which also suits v5e's f32-only vector path).
    """
    n, cin, h, w = x.shape
    cin2, cout, k, k2 = V.shape
    assert cin == cin2 and k == k2

    # -- 1. weight normalization (faithful to the raw .view(Cout, -1) in PyTorch) ----
    v_rows = V.reshape(cout, cin * k * k)
    norms = jnp.sqrt(jnp.sum(v_rows * v_rows, axis=1, keepdims=True))
    v_norm = (v_rows / jnp.maximum(norms, 1e-12)).reshape(cin, cout, k, k)
    # tap (dh, dw) of the padded input pairs with the spatially flipped kernel
    w_knl = jnp.transpose(jnp.flip(v_norm, axis=(2, 3)), (2, 3, 0, 1))   # (k,k,Cin,Cout)

    # -- 2. conv_transpose geometry: zero-dilate + pad the NHWC input -----------------
    if padding == "SAME":
        ho, wo = h * stride, w * stride
        lt = (k - 1) // 2
    else:                                     # 'VALID': out = in*stride + k - 1
        ho, wo = h * stride + k - 1, w * stride + k - 1
        lt = k - 1
    hd, wd = (h - 1) * stride + 1, (w - 1) * stride + 1
    rb_h = ho - hd + (k - 1) - lt
    rb_w = wo - wd + (k - 1) - lt

    vmem_limit = _vmem_limit_bytes()
    th = row_tile if row_tile is not None else _pick_row_tile(n, ho, wo, cout, vmem_limit)
    th = max(1, min(th, ho))
    n_h = -(-ho // th)                        # cdiv
    ho_pad = n_h * th                         # exact row tiling; padded rows are masked
    extra_h = ho_pad - ho

    x_nhwc = jnp.transpose(x, (0, 2, 3, 1))
    # single lax.pad does zero-dilation (interior) + left/right halo + row-tile padding
    x_pad = lax.pad(x_nhwc, jnp.zeros((), x_nhwc.dtype),
                    ((0, 0, 0),
                     (lt, rb_h + extra_h, stride - 1),
                     (lt, rb_w, stride - 1),
                     (0, 0, 0)))              # (N, ho_pad + k - 1, wo + k - 1, Cin)

    cdt = compute_dtype if compute_dtype is not None else x.dtype
    x_pad = x_pad.astype(cdt)
    w_knl_c = w_knl.astype(cdt)

    # -- 3./4. fused Pallas conv (+ stat partials, + fused affine when initial) -------
    if initial:
        g_arr = g if g is not None else jnp.ones((cout,), jnp.float32)
        b_arr = b if b is not None else jnp.zeros((cout,), jnp.float32)
        g_row = jnp.asarray(g_arr, jnp.float32).reshape(1, cout)
        b_row = jnp.asarray(b_arr, jnp.float32).reshape(1, cout)
        y_pad, _ = _fused_conv_transpose(
            x_pad, w_knl_c, g_row, b_row, th=th, ho=ho, wo=wo, k=k,
            apply_affine=True, y_dtype=x.dtype, vmem_limit=vmem_limit)
        out_nhwc = y_pad
    else:
        ones = jnp.ones((1, cout), jnp.float32)
        zeros = jnp.zeros((1, cout), jnp.float32)
        y_pad, stats = _fused_conv_transpose(
            x_pad, w_knl_c, ones, zeros, th=th, ho=ho, wo=wo, k=k,
            apply_affine=False, y_dtype=jnp.float32, vmem_limit=vmem_limit)
        # data-dependent g/b from the in-kernel f32 partial sums (no extra pass over y)
        count = float(n * ho * wo)
        s1 = jnp.sum(stats[:, :, 0, :], axis=(0, 1))
        s2 = jnp.sum(stats[:, :, 1, :], axis=(0, 1))
        mean = s1 / count
        var = (s2 - count * mean * mean) / (count - 1.0)    # torch.var default: unbiased
        g_eff = init_scale / jnp.sqrt(var + 1e-10)
        b_eff = -mean * g_eff
        out_nhwc = _affine_epilogue(y_pad, g_eff.reshape(1, cout),
                                    b_eff.reshape(1, cout), x.dtype,
                                    th=th, vmem_limit=vmem_limit)

    # -- 5. crop padded rows and return NCHW ------------------------------------------
    out = out_nhwc[:, :ho, :, :]
    return jnp.transpose(out, (0, 3, 1, 2))


# ----------------------------------------------------------------------------------
# Pure-JAX reference (XLA conv with lhs dilation) for the correctness check
# ----------------------------------------------------------------------------------
def _reference(x, V, *, stride=1, padding="SAME", init_scale=1.0, initial=False):
    n, cin, h, w = x.shape
    _, cout, k, _ = V.shape
    v_rows = V.reshape(cout, cin * k * k)
    norms = jnp.sqrt(jnp.sum(v_rows * v_rows, axis=1, keepdims=True))
    v_norm = (v_rows / jnp.maximum(norms, 1e-12)).reshape(cin, cout, k, k)
    w_oihw = jnp.transpose(jnp.flip(v_norm, axis=(2, 3)), (1, 0, 2, 3))
    if padding == "SAME":
        ho, wo = h * stride, w * stride
        lt = (k - 1) // 2
    else:
        ho, wo = h * stride + k - 1, w * stride + k - 1
        lt = k - 1
    rb_h = ho - ((h - 1) * stride + 1) + k - 1 - lt
    rb_w = wo - ((w - 1) * stride + 1) + k - 1 - lt
    y = lax.conv_general_dilated(
        x, w_oihw, window_strides=(1, 1), padding=((lt, rb_h), (lt, rb_w)),
        lhs_dilation=(stride, stride),
        dimension_numbers=("NCHW", "OIHW", "NCHW"),
        precision=lax.Precision.HIGHEST)
    if not initial:
        mean = jnp.mean(y, axis=(0, 2, 3), keepdims=True)
        var = jnp.var(y, axis=(0, 2, 3), keepdims=True, ddof=1)
        gg = init_scale / jnp.sqrt(var + 1e-10)
        bb = -mean * gg
        y = y * gg + bb
    return y


if __name__ == "__main__":
    key = jax.random.PRNGKey(0)
    k_x, k_v = jax.random.split(key)

    # small shapes consistent with the module: NCHW input, 3x3 kernel
    batch, cin, cout, hw, ksz = 2, 4, 8, 16, 3
    x = jax.random.normal(k_x, (batch, cin, hw, hw), dtype=jnp.float32)
    V = 0.05 * jax.random.normal(k_v, (cin, cout, ksz, ksz), dtype=jnp.float32)  # init std=0.05
    g = jnp.ones((cout,), jnp.float32)        # init.constant_(g, 1.0)
    b = jnp.zeros((cout,), jnp.float32)       # init.constant_(b, 0.0)

    # data-dependent g/b path (initial=False), f32
    y = weight_norm_conv_transpose2d(x, V, g, b, stride=1, padding="SAME",
                                     init_scale=1.0, initial=False)
    y = jax.block_until_ready(y)
    y_ref = _reference(x, V, stride=1, padding="SAME", init_scale=1.0, initial=False)
    assert y.shape == (batch, cout, hw, hw)
    assert jnp.allclose(y, y_ref, atol=1e-2, rtol=1e-2), float(jnp.max(jnp.abs(y - y_ref)))

    # ragged row tiling (exercises the padded-row masking of the in-kernel stats)
    y_rt = weight_norm_conv_transpose2d(x, V, g, b, stride=1, padding="SAME",
                                        init_scale=1.0, initial=False, row_tile=6)
    y_rt = jax.block_until_ready(y_rt)
    assert jnp.allclose(y_rt, y_ref, atol=1e-2, rtol=1e-2)

    # initial=True path (affine fused into the conv kernel, no epilogue pass)
    y_init = weight_norm_conv_transpose2d(x, V, g, b, stride=1, padding="SAME",
                                          init_scale=1.0, initial=True)
    y_init = jax.block_until_ready(y_init)
    y_init_ref = _reference(x, V, stride=1, padding="SAME", init_scale=1.0, initial=True)
    assert jnp.allclose(y_init, y_init_ref, atol=1e-3, rtol=1e-3)

    # stride=2 (zero-dilated input) path
    y_s2 = weight_norm_conv_transpose2d(x, V, g, b, stride=2, padding="SAME",
                                        init_scale=1.0, initial=False)
    y_s2 = jax.block_until_ready(y_s2)
    y_s2_ref = _reference(x, V, stride=2, padding="SAME", init_scale=1.0, initial=False)
    assert y_s2.shape == (batch, cout, 2 * hw, 2 * hw)
    assert jnp.allclose(y_s2, y_s2_ref, atol=1e-2, rtol=1e-2)

    # bf16 MXU-operand path (f32 accumulation / f32 stats, recommended on v6e/v7x)
    y_bf16 = weight_norm_conv_transpose2d(x, V, g, b, stride=1, padding="SAME",
                                          init_scale=1.0, initial=False,
                                          compute_dtype=jnp.bfloat16)
    y_bf16 = jax.block_until_ready(y_bf16)
    assert jnp.allclose(y_bf16, y_ref, atol=5e-2, rtol=5e-2)

    print("KERNEL_OK")
</pallas_src>

<mosaic_0001>
module attributes {stable_mosaic.version = 11 : i64} {
  func.func @_fused_convt_kernel(%arg0: i32, %arg1: i32, %arg2: memref<1x18x18x4xf32, #tpu.memory_space<vmem>>, %arg3: memref<3x3x4x8xf32, #tpu.memory_space<vmem>>, %arg4: memref<1x8xf32, #tpu.memory_space<vmem>>, %arg5: memref<1x8xf32, #tpu.memory_space<vmem>>, %arg6: memref<1x16x16x8xf32, #tpu.memory_space<vmem>>, %arg7: memref<1x1x8x8xf32, #tpu.memory_space<vmem>>) attributes {dimension_semantics = [#tpu.dimension_semantics<parallel>, #tpu.dimension_semantics<parallel>], iteration_bounds = array<i64: 2, 1>, scalar_prefetch = 0 : i64, scratch_operands = 0 : i64, tpu.core_type = #tpu.core_type<tc>, window_params = [{transform_indices = @transform_0, window_bounds = array<i64: 1, 18, 18, 4>}, {pipeline_mode = #tpu.pipeline_mode<synchronous>, transform_indices = @transform_1, window_bounds = array<i64: 3, 3, 4, 8>}, {pipeline_mode = #tpu.pipeline_mode<synchronous>, transform_indices = @transform_2, window_bounds = array<i64: 1, 8>}, {pipeline_mode = #tpu.pipeline_mode<synchronous>, transform_indices = @transform_3, window_bounds = array<i64: 1, 8>}, {transform_indices = @transform_4, window_bounds = array<i64: 1, 16, 16, 8>}, {transform_indices = @transform_5, window_bounds = array<i64: 1, 1, 8, 8>}]} {
    %c16_i32 = arith.constant 16 : i32
    %0 = arith.muli %arg1, %c16_i32 : i32
    %cst = arith.constant 0.000000e+00 : f32
    %1 = vector.broadcast %cst : f32 to vector<256x8xf32>
    %c0_i32 = arith.constant 0 : i32
    %2 = arith.addi %0, %c0_i32 : i32
    %c0 = arith.constant 0 : index
    %3 = arith.index_cast %2 : i32 to index
    %c0_0 = arith.constant 0 : index
    %c0_1 = arith.constant 0 : index
    %4 = vector.load %arg2[%c0, %3, %c0_0, %c0_1] : memref<1x18x18x4xf32, #tpu.memory_space<vmem>>, vector<1x16x16x4xf32>
    %5 = vector.shape_cast %4 : vector<1x16x16x4xf32> to vector<16x16x4xf32>
    %6 = vector.shape_cast %5 : vector<16x16x4xf32> to vector<256x4xf32>
    %c0_2 = arith.constant 0 : index
    %c0_3 = arith.constant 0 : index
    %c0_4 = arith.constant 0 : index
    %c0_5 = arith.constant 0 : index
    %7 = vector.load %arg3[%c0_2, %c0_3, %c0_4, %c0_5] : memref<3x3x4x8xf32, #tpu.memory_space<vmem>>, vector<1x1x4x8xf32>
    %8 = vector.shape_cast %7 : vector<1x1x4x8xf32> to vector<4x8xf32>
    %cst_6 = arith.constant dense<0.000000e+00> : vector<256x8xf32>
    %9 = tpu.matmul %6, %8, %cst_6 {dimension_numbers = #tpu.dot_dimension_numbers<[1], [0], [0], [1], [0, 0, 1, 1], [], []>} : vector<256x4xf32>, vector<4x8xf32>, vector<256x8xf32> -> vector<256x8xf32>
    %10 = arith.addf %1, %9 : vector<256x8xf32>
    %c0_i32_7 = arith.constant 0 : i32
    %11 = arith.addi %0, %c0_i32_7 : i32
    %c0_8 = arith.constant 0 : index
    %12 = arith.index_cast %11 : i32 to index
    %c1 = arith.constant 1 : index
    %c0_9 = arith.constant 0 : index
    %13 = vector.load %arg2[%c0_8, %12, %c1, %c0_9] : memref<1x18x18x4xf32, #tpu.memory_space<vmem>>, vector<1x16x16x4xf32>
    %14 = vector.shape_cast %13 : vector<1x16x16x4xf32> to vector<16x16x4xf32>
    %15 = vector.shape_cast %14 : vector<16x16x4xf32> to vector<256x4xf32>
    %c0_10 = arith.constant 0 : index
    %c1_11 = arith.constant 1 : index
    %c0_12 = arith.constant 0 : index
    %c0_13 = arith.constant 0 : index
    %16 = vector.load %arg3[%c0_10, %c1_11, %c0_12, %c0_13] : memref<3x3x4x8xf32, #tpu.memory_space<vmem>>, vector<1x1x4x8xf32>
    %17 = vector.shape_cast %16 : vector<1x1x4x8xf32> to vector<4x8xf32>
    %cst_14 = arith.constant dense<0.000000e+00> : vector<256x8xf32>
    %18 = tpu.matmul %15, %17, %cst_14 {dimension_numbers = #tpu.dot_dimension_numbers<[1], [0], [0], [1], [0, 0, 1, 1], [], []>} : vector<256x4xf32>, vector<4x8xf32>, vector<256x8xf32> -> vector<256x8xf32>
    %19 = arith.addf %10, %18 : vector<256x8xf32>
    %c0_i32_15 = arith.constant 0 : i32
    %20 = arith.addi %0, %c0_i32_15 : i32
    %c0_16 = arith.constant 0 : index
    %21 = arith.index_cast %20 : i32 to index
    %c2 = arith.constant 2 : index
    %c0_17 = arith.constant 0 : index
    %22 = vector.load %arg2[%c0_16, %21, %c2, %c0_17] : memref<1x18x18x4xf32, #tpu.memory_space<vmem>>, vector<1x16x16x4xf32>
    %23 = vector.shape_cast %22 : vector<1x16x16x4xf32> to vector<16x16x4xf32>
    %24 = vector.shape_cast %23 : vector<16x16x4xf32> to vector<256x4xf32>
    %c0_18 = arith.constant 0 : index
    %c2_19 = arith.constant 2 : index
    %c0_20 = arith.constant 0 : index
    %c0_21 = arith.constant 0 : index
    %25 = vector.load %arg3[%c0_18, %c2_19, %c0_20, %c0_21] : memref<3x3x4x8xf32, #tpu.memory_space<vmem>>, vector<1x1x4x8xf32>
    %26 = vector.shape_cast %25 : vector<1x1x4x8xf32> to vector<4x8xf32>
    %cst_22 = arith.constant dense<0.000000e+00> : vector<256x8xf32>
    %27 = tpu.matmul %24, %26, %cst_22 {dimension_numbers = #tpu.dot_dimension_numbers<[1], [0], [0], [1], [0, 0, 1, 1], [], []>} : vector<256x4xf32>, vector<4x8xf32>, vector<256x8xf32> -> vector<256x8xf32>
    %28 = arith.addf %19, %27 : vector<256x8xf32>
    %c1_i32 = arith.constant 1 : i32
    %29 = arith.addi %0, %c1_i32 : i32
    %c0_23 = arith.constant 0 : index
    %30 = arith.index_cast %29 : i32 to index
    %c0_24 = arith.constant 0 : index
    %c0_25 = arith.constant 0 : index
    %31 = vector.load %arg2[%c0_23, %30, %c0_24, %c0_25] : memref<1x18x18x4xf32, #tpu.memory_space<vmem>>, vector<1x16x16x4xf32>
    %32 = vector.shape_cast %31 : vector<1x16x16x4xf32> to vector<16x16x4xf32>
    %33 = vector.shape_cast %32 : vector<16x16x4xf32> to vector<256x4xf32>
    %c1_26 = arith.constant 1 : index
    %c0_27 = arith.constant 0 : index
    %c0_28 = arith.constant 0 : index
    %c0_29 = arith.constant 0 : index
    %34 = vector.load %arg3[%c1_26, %c0_27, %c0_28, %c0_29] : memref<3x3x4x8xf32, #tpu.memory_space<vmem>>, vector<1x1x4x8xf32>
    %35 = vector.shape_cast %34 : vector<1x1x4x8xf32> to vector<4x8xf32>
    %cst_30 = arith.constant dense<0.000000e+00> : vector<256x8xf32>
    %36 = tpu.matmul %33, %35, %cst_30 {dimension_numbers = #tpu.dot_dimension_numbers<[1], [0], [0], [1], [0, 0, 1, 1], [], []>} : vector<256x4xf32>, vector<4x8xf32>, vector<256x8xf32> -> vector<256x8xf32>
    %37 = arith.addf %28, %36 : vector<256x8xf32>
    %c1_i32_31 = arith.constant 1 : i32
    %38 = arith.addi %0, %c1_i32_31 : i32
    %c0_32 = arith.constant 0 : index
    %39 = arith.index_cast %38 : i32 to index
    %c1_33 = arith.constant 1 : index
    %c0_34 = arith.constant 0 : index
    %40 = vector.load %arg2[%c0_32, %39, %c1_33, %c0_34] : memref<1x18x18x4xf32, #tpu.memory_space<vmem>>, vector<1x16x16x4xf32>
    %41 = vector.shape_cast %40 : vector<1x16x16x4xf32> to vector<16x16x4xf32>
    %42 = vector.shape_cast %41 : vector<16x16x4xf32> to vector<256x4xf32>
    %c1_35 = arith.constant 1 : index
    %c1_36 = arith.constant 1 : index
    %c0_37 = arith.constant 0 : index
    %c0_38 = arith.constant 0 : index
    %43 = vector.load %arg3[%c1_35, %c1_36, %c0_37, %c0_38] : memref<3x3x4x8xf32, #tpu.memory_space<vmem>>, vector<1x1x4x8xf32>
    %44 = vector.shape_cast %43 : vector<1x1x4x8xf32> to vector<4x8xf32>
    %cst_39 = arith.constant dense<0.000000e+00> : vector<256x8xf32>
    %45 = tpu.matmul %42, %44, %cst_39 {dimension_numbers = #tpu.dot_dimension_numbers<[1], [0], [0], [1], [0, 0, 1, 1], [], []>} : vector<256x4xf32>, vector<4x8xf32>, vector<256x8xf32> -> vector<256x8xf32>
    %46 = arith.addf %37, %45 : vector<256x8xf32>
    %c1_i32_40 = arith.constant 1 : i32
    %47 = arith.addi %0, %c1_i32_40 : i32
    %c0_41 = arith.constant 0 : index
    %48 = arith.index_cast %47 : i32 to index
    %c2_42 = arith.constant 2 : index
    %c0_43 = arith.constant 0 : index
    %49 = vector.load %arg2[%c0_41, %48, %c2_42, %c0_43] : memref<1x18x18x4xf32, #tpu.memory_space<vmem>>, vector<1x16x16x4xf32>
    %50 = vector.shape_cast %49 : vector<1x16x16x4xf32> to vector<16x16x4xf32>
    %51 = vector.shape_cast %50 : vector<16x16x4xf32> to vector<256x4xf32>
    %c1_44 = arith.constant 1 : index
    %c2_45 = arith.constant 2 : index
    %c0_46 = arith.constant 0 : index
    %c0_47 = arith.constant 0 : index
    %52 = vector.load %arg3[%c1_44, %c2_45, %c0_46, %c0_47] : memref<3x3x4x8xf32, #tpu.memory_space<vmem>>, vector<1x1x4x8xf32>
    %53 = vector.shape_cast %52 : vector<1x1x4x8xf32> to vector<4x8xf32>
    %cst_48 = arith.constant dense<0.000000e+00> : vector<256x8xf32>
    %54 = tpu.matmul %51, %53, %cst_48 {dimension_numbers = #tpu.dot_dimension_numbers<[1], [0], [0], [1], [0, 0, 1, 1], [], []>} : vector<256x4xf32>, vector<4x8xf32>, vector<256x8xf32> -> vector<256x8xf32>
    %55 = arith.addf %46, %54 : vector<256x8xf32>
    %c2_i32 = arith.constant 2 : i32
    %56 = arith.addi %0, %c2_i32 : i32
    %c0_49 = arith.constant 0 : index
    %57 = arith.index_cast %56 : i32 to index
    %c0_50 = arith.constant 0 : index
    %c0_51 = arith.constant 0 : index
    %58 = vector.load %arg2[%c0_49, %57, %c0_50, %c0_51] : memref<1x18x18x4xf32, #tpu.memory_space<vmem>>, vector<1x16x16x4xf32>
    %59 = vector.shape_cast %58 : vector<1x16x16x4xf32> to vector<16x16x4xf32>
    %60 = vector.shape_cast %59 : vector<16x16x4xf32> to vector<256x4xf32>
    %c2_52 = arith.constant 2 : index
    %c0_53 = arith.constant 0 : index
    %c0_54 = arith.constant 0 : index
    %c0_55 = arith.constant 0 : index
    %61 = vector.load %arg3[%c2_52, %c0_53, %c0_54, %c0_55] : memref<3x3x4x8xf32, #tpu.memory_space<vmem>>, vector<1x1x4x8xf32>
    %62 = vector.shape_cast %61 : vector<1x1x4x8xf32> to vector<4x8xf32>
    %cst_56 = arith.constant dense<0.000000e+00> : vector<256x8xf32>
    %63 = tpu.matmul %60, %62, %cst_56 {dimension_numbers = #tpu.dot_dimension_numbers<[1], [0], [0], [1], [0, 0, 1, 1], [], []>} : vector<256x4xf32>, vector<4x8xf32>, vector<256x8xf32> -> vector<256x8xf32>
    %64 = arith.addf %55, %63 : vector<256x8xf32>
    %c2_i32_57 = arith.constant 2 : i32
    %65 = arith.addi %0, %c2_i32_57 : i32
    %c0_58 = arith.constant 0 : index
    %66 = arith.index_cast %65 : i32 to index
    %c1_59 = arith.constant 1 : index
    %c0_60 = arith.constant 0 : index
    %67 = vector.load %arg2[%c0_58, %66, %c1_59, %c0_60] : memref<1x18x18x4xf32, #tpu.memory_space<vmem>>, vector<1x16x16x4xf32>
    %68 = vector.shape_cast %67 : vector<1x16x16x4xf32> to vector<16x16x4xf32>
    %69 = vector.shape_cast %68 : vector<16x16x4xf32> to vector<256x4xf32>
    %c2_61 = arith.constant 2 : index
    %c1_62 = arith.constant 1 : index
    %c0_63 = arith.constant 0 : index
    %c0_64 = arith.constant 0 : index
    %70 = vector.load %arg3[%c2_61, %c1_62, %c0_63, %c0_64] : memref<3x3x4x8xf32, #tpu.memory_space<vmem>>, vector<1x1x4x8xf32>
    %71 = vector.shape_cast %70 : vector<1x1x4x8xf32> to vector<4x8xf32>
    %cst_65 = arith.constant dense<0.000000e+00> : vector<256x8xf32>
    %72 = tpu.matmul %69, %71, %cst_65 {dimension_numbers = #tpu.dot_dimension_numbers<[1], [0], [0], [1], [0, 0, 1, 1], [], []>} : vector<256x4xf32>, vector<4x8xf32>, vector<256x8xf32> -> vector<256x8xf32>
    %73 = arith.addf %64, %72 : vector<256x8xf32>
    %c2_i32_66 = arith.constant 2 : i32
    %74 = arith.addi %0, %c2_i32_66 : i32
    %c0_67 = arith.constant 0 : index
    %75 = arith.index_cast %74 : i32 to index
    %c2_68 = arith.constant 2 : index
    %c0_69 = arith.constant 0 : index
    %76 = vector.load %arg2[%c0_67, %75, %c2_68, %c0_69] : memref<1x18x18x4xf32, #tpu.memory_space<vmem>>, vector<1x16x16x4xf32>
    %77 = vector.shape_cast %76 : vector<1x16x16x4xf32> to vector<16x16x4xf32>
    %78 = vector.shape_cast %77 : vector<16x16x4xf32> to vector<256x4xf32>
    %c2_70 = arith.constant 2 : index
    %c2_71 = arith.constant 2 : index
    %c0_72 = arith.constant 0 : index
    %c0_73 = arith.constant 0 : index
    %79 = vector.load %arg3[%c2_70, %c2_71, %c0_72, %c0_73] : memref<3x3x4x8xf32, #tpu.memory_space<vmem>>, vector<1x1x4x8xf32>
    %80 = vector.shape_cast %79 : vector<1x1x4x8xf32> to vector<4x8xf32>
    %cst_74 = arith.constant dense<0.000000e+00> : vector<256x8xf32>
    %81 = tpu.matmul %78, %80, %cst_74 {dimension_numbers = #tpu.dot_dimension_numbers<[1], [0], [0], [1], [0, 0, 1, 1], [], []>} : vector<256x4xf32>, vector<4x8xf32>, vector<256x8xf32> -> vector<256x8xf32>
    %82 = arith.addf %73, %81 : vector<256x8xf32>
    %cst_75 = arith.constant dense<0.000000e+00> : vector<8xf32>
    %83 = vector.multi_reduction <add>, %82, %cst_75 [0] : vector<256x8xf32> to vector<8xf32>
    %84 = vector.shape_cast %83 : vector<8xf32> to vector<1x8xf32>
    %85 = arith.mulf %82, %82 : vector<256x8xf32>
    %cst_76 = arith.constant dense<0.000000e+00> : vector<8xf32>
    %86 = vector.multi_reduction <add>, %85, %cst_76 [0] : vector<256x8xf32> to vector<8xf32>
    %87 = vector.shape_cast %86 : vector<8xf32> to vector<1x8xf32>
    %cst_77 = arith.constant 0.000000e+00 : f32
    %88 = vector.broadcast %cst_77 : f32 to vector<6x8xf32>
    %89 = tpu.concatenate %84, %87, %88 in 0 : vector<1x8xf32>, vector<1x8xf32>, vector<6x8xf32> -> vector<8x8xf32>
    %c0_78 = arith.constant 0 : index
    %c0_79 = arith.constant 0 : index
    %c0_80 = arith.constant 0 : index
    %c0_81 = arith.constant 0 : index
    %90 = vector.load %arg7[%c0_78, %c0_79, %c0_80, %c0_81] : memref<1x1x8x8xf32, #tpu.memory_space<vmem>>, vector<1x1x8x8xf32>
    %91 = vector.shape_cast %90 : vector<1x1x8x8xf32> to vector<8x8xf32>
    %92 = vector.shape_cast %89 : vector<8x8xf32> to vector<1x1x8x8xf32>
    tpu.vector_store %arg7[%c0_78, %c0_79, %c0_80, %c0_81], %92 {strides = array<i32>} : memref<1x1x8x8xf32, #tpu.memory_space<vmem>>, vector<1x1x8x8xf32>,
    %93 = vector.shape_cast %82 : vector<256x8xf32> to vector<16x16x8xf32>
    %c0_82 = arith.constant 0 : index
    %c0_83 = arith.constant 0 : index
    %c0_84 = arith.constant 0 : index
    %c0_85 = arith.constant 0 : index
    %94 = vector.load %arg6[%c0_82, %c0_83, %c0_84, %c0_85] : memref<1x16x16x8xf32, #tpu.memory_space<vmem>>, vector<1x16x16x8xf32>
    %95 = vector.shape_cast %94 : vector<1x16x16x8xf32> to vector<16x16x8xf32>
    %96 = vector.shape_cast %93 : vector<16x16x8xf32> to vector<1x16x16x8xf32>
    tpu.vector_store %arg6[%c0_82, %c0_83, %c0_84, %c0_85], %96 {strides = array<i32>} : memref<1x16x16x8xf32, #tpu.memory_space<vmem>>, vector<1x16x16x8xf32>,
    return
  }
  func.func @transform_0(%arg0: i32, %arg1: i32) -> (i32, i32, i32, i32) {
    %c0_i32 = arith.constant 0 : i32
    %c0_i32_0 = arith.constant 0 : i32
    %c0_i32_1 = arith.constant 0 : i32
    %c0_i32_2 = arith.constant 0 : i32
    return %arg0, %c0_i32, %c0_i32_0, %c0_i32_1 : i32, i32, i32, i32
  }
  func.func @transform_1(%arg0: i32, %arg1: i32) -> (i32, i32, i32, i32) {
    %c0_i32 = arith.constant 0 : i32
    %c0_i32_0 = arith.constant 0 : i32
    %c0_i32_1 = arith.constant 0 : i32
    %c0_i32_2 = arith.constant 0 : i32
    %c0_i32_3 = arith.constant 0 : i32
    return %c0_i32, %c0_i32_0, %c0_i32_1, %c0_i32_2 : i32, i32, i32, i32
  }
  func.func @transform_2(%arg0: i32, %arg1: i32) -> (i32, i32) {
    %c0_i32 = arith.constant 0 : i32
    %c0_i32_0 = arith.constant 0 : i32
    %c0_i32_1 = arith.constant 0 : i32
    return %c0_i32, %c0_i32_0 : i32, i32
  }
  func.func @transform_3(%arg0: i32, %arg1: i32) -> (i32, i32) {
    %c0_i32 = arith.constant 0 : i32
    %c0_i32_0 = arith.constant 0 : i32
    %c0_i32_1 = arith.constant 0 : i32
    return %c0_i32, %c0_i32_0 : i32, i32
  }
  func.func @transform_4(%arg0: i32, %arg1: i32) -> (i32, i32, i32, i32) {
    %c0_i32 = arith.constant 0 : i32
    %c0_i32_0 = arith.constant 0 : i32
    %c0_i32_1 = arith.constant 0 : i32
    return %arg0, %arg1, %c0_i32, %c0_i32_0 : i32, i32, i32, i32
  }
  func.func @transform_5(%arg0: i32, %arg1: i32) -> (i32, i32, i32, i32) {
    %c0_i32 = arith.constant 0 : i32
    %c0_i32_0 = arith.constant 0 : i32
    %c0_i32_1 = arith.constant 0 : i32
    return %arg0, %arg1, %c0_i32, %c0_i32_0 : i32, i32, i32, i32
  }
}

</mosaic_0001>

<bundles_post_ra>
// kernel: tpu_custom_call.1
= control target key start
LH: loop header
LB: loop body
LE: loop exit
PB: predicated region body
PF: predicated region fallthrough
CT: control target
= control target key end

     0   :  { %11 = vsyncpa [#allocation3], 0  ;;  %s6960_s0 = inlined_call_operand.vmem [shape: f32[2,18,18,4], index: 0, kind: input, shape index: {}]   ;;  %s6961_s1 = inlined_call_operand.vmem [shape: f32[3,3,4,8], index: 1, kind: input, shape index: {}]   ;;  %s6962_s2 = inlined_call_operand.vmem [shape: f32[1,8], index: 2, kind: input, shape index: {}]   ;;  %s6963_s3 = inlined_call_operand.vmem [shape: f32[1,8], index: 3, kind: input, shape index: {}]   ;;  %s6964_s4 = inlined_call_operand.vmem [shape: f32[2,16,16,8], index: 4, kind: output, shape index: {0}]   ;;  %s6965_s5 = inlined_call_operand.hbm [shape: f32[2,1,8,8], index: 5, kind: output, shape index: {1}]  }
   0x1   :  { %13 = vsyncpa [#allocation3 + $0x1], 0  ;;  %s5759_s18 = smov 0   ;;  %s5761_s19 = smov 0  }
   0x2   :  { %s5763_s20 = smov 0   ;;  %s5765_s21 = smov 0  }
   0x3   :  { %s5767_s2 = smov 0   ;;  %s5769_s22 = smov 0  }
   0x4 LB: > { %s4076_s3 = sadd.s32 4294967295, %s5726_s22   ;;  %s4077_s23 = sadd.s32 4294967294, %s5726_s22   ;;  %s5726_s22 = sphi %s5769_s22, %s19_s22   ;;  %s5722_s2 = sphi %s5767_s2, %s7081_s2   ;;  %s5718_s21 = sphi %s5765_s21, %s7080_s21   ;;  %s5714_s20 = sphi %s5763_s20, %s7079_s20   ;;  %s5710_s19 = sphi %s5761_s19, %s7078_s19   ;;  %s5706_s18 = sphi %s5759_s18, %s7077_s18  }
   0x5   : > { %s31_s24 = sadd.s32 1, %s5722_s2  ;;  %s157_s25 = sadd.s32 1, %s5714_s20 }
   0x6   : > { %p33_p0 = scmp.ge.s32.totalorder %s31_s24, 2  ;;  %p167_p1 = scmp.ne.s32.totalorder %s5714_s20, %s5710_s19 }
   0x7   : > { %p168_p2 = scmp.eq.s32.totalorder %s4076_s3, 1  ;;  %p173_p3 = scmp.ne.s32.totalorder %s5710_s19, %s5706_s18 }
   0x8   : > { %s7083_s24 = smov (%p33_p0, %s31_s24), 0  ;;  %p174_p5 = scmp.eq.s32.totalorder %s4077_s23, 1 }
   0x9   : > { %p5799_p4 = por %p168_p2, %p167_p1  ;;  %s152_s27 = ssub.s32 %s5722_s2, %s7083_s24 }
   0xa   : > { %p4080_p6 = scmp.ge.s32.totalorder %s5726_s22, 1  ;;  %p155_p7 = scmp.eq.s32.totalorder %s152_s27, 0 }
   0xb   : > { %p5806_p8 = por %p174_p5, %p173_p3  ;;  %p209_p9 = scmp.lt.s32.totalorder %s5726_s22, 3 }
   0xc   : > { %s5812_s29 = scalar_select %p155_p7, %s5714_s20, %s157_s25  }
   0xd   : > { %p210_p10 = pnand %p4080_p6, %p209_p9 }
   0xf   : > { %213 = sbr.rel (%p210_p10) target bundleno = 565 (0x235), region = 36 }
  0x16   : > { %v4085_v0 = vld [vmem:[%s6961_s1 + $0x4] sm:$0xf]  ;;  %vm430_vm0 = vcmask 1043456   ;;  %v5820_v1 = vld [vmem:[%s6961_s1 + $0x10] sm:$0xf]  ;;  %p247_p11 = scmp.lt.s32.totalorder %s5718_s21, 1 }
  0x17   : > { %4884 = vmatprep.subr.msk.mxu1 %vm430_vm0, %v4085_v0  ;;  %5084 = vmatprep.subr.msk.mxu0 %vm430_vm0, %v5820_v1  ;;  %v298_v2 = vld [vmem:[%s6961_s1] sm:$0xf]  ;;  %v4350_v3 = vld [vmem:[%s6961_s1 + $0x14] sm:$0xf]  ;;  %vm333_vm1 = vcmask 31744   ;;  %vm3719_vm2 = vcmask 64512  }
  0x18   : > { %4885 = vmatpush3.msk.msra.mxu1 %vm430_vm0, %v4085_v0  ;;  %5085 = vmatpush3.msk.msra.mxu0 %vm430_vm0, %v5820_v1  ;;  %s5836_s13 = scalar_select %p247_p11, %s5718_s21, 1  ;;  %v4416_v9 = vld [vmem:[%s6961_s1 + $0x18] sm:$0xf]  ;;  %v5863_v10 = vld [vmem:[%s6961_s1 + $0x8] sm:$0xf]  ;;  %vm3890_vm3 = vcmask 1040384  }
  0x19   : > { %4934 = vmatprep.subr.msk.mxu1 %vm430_vm0, %v298_v2  ;;  %5134 = vmatprep.subr.msk.mxu0 %vm430_vm0, %v4350_v3  ;;  %v5982_v28 = vld [vmem:[%s6961_s1 + $0x1c] sm:$0xf]  ;;  %v6145_v61 = vld [vmem:[%s6961_s1 + $0xc] sm:$0xf]  ;;  %vm3892_vm4 = vcmask 1041408   ;;  %s5728_s7 = smov [#allocation2]  }
  0x1a   : > { %s5592_s14 = smul.u32 432, %s5836_s13  ;;  %s4586_s11 = sshll.u32 %s5836_s13, 8 }
  0x1b   : > { %s6769_s15 = scalar_lea.vmem %s6964_s4, %s4586_s11  ;;  %s244_s13 = sand.u32 1, %s5710_s19  }
  0x1c   : > { %s5844_s17 = scalar_lea.vmem %s6960_s0, %s5592_s14  ;;  %s4081_s16 = sshll.u32 %s244_s13, 3 }
  0x1d   : > { %v299_v4 = vld [vmem:[%s5844_s17 + $0x1] sm:$0xff]  ;;  %v4252_v5 = vld [vmem:[%s5844_s17 + $0x19] sm:$0xff]  ;;  %v300_v6 = vld [vmem:[%s5844_s17 + $0x9] sm:$0xff]  ;;  %s246_s3 = scalar_lea.vmem [#allocation2], %s4081_s16  ;;  %s5652_s8 = sshll.u32 %s5728_s7, 4  ;;  %s5653_s8 = int_to_ptr.vmem [resolvable:$false] %s5652_s8 }
  0x1e   : > { %4886 = vmatprep.mubr.msk.f32.mxu1 %vm333_vm1, %v299_v4  ;;  %5086 = vmatprep.mubr.msk.f32.mxu0 %vm333_vm1, %v4252_v5  ;;  %v4253_v7 = vld [vmem:[%s5844_s17 + $0x21] sm:$0xff]  ;;  %v5853_v8 = vld [vmem:[%s5844_s17 + $0x31] sm:$0xff]  ;;  %v5868_v11 = vld [vmem:[%s5844_s17 + $0x39] sm:$0xff]  ;;  %s3956_s23 = sshll.u32 %s246_s3, 4  ;;  %s5654_s9 = scalar_lea.vmem %s5653_s8, 256  ;;  %s6914_s23 = int_to_ptr.vmem [resolvable:$true] %s3956_s23 }
  0x1f   : > { %4887 = vmatmul.mubr.msk.f32.vlgmr.msra.gmra.mrb[0].mxu1 %vm333_vm1, %v300_v6  ;;  %5087 = vmatmul.mubr.msk.f32.vlgmr.msra.gmra.mrb[0].mxu0 %vm333_vm1, %v4253_v7  ;;  %v5874_v12 = vld [vmem:[%s5844_s17 + $0x49] sm:$0xff]  ;;  %v5887_v13 = vld [vmem:[%s5844_s17 + $0x51] sm:$0xff]  ;;  %v5890_v14 = vld [vmem:[%s5844_s17 + $0x61] sm:$0xff]  ;;  %s5648_s6 = scalar_lea.vmem %s6914_s23, 128  ;;  %p5655_p1 = scmp.lt.s32.totalorder %s6914_s23, %s5653_s8 }
  0x20   : > { %4935 = vmatpush3.msk.msra.mxu1 %vm430_vm0, %v298_v2  ;;  %5135 = vmatpush3.msk.msra.mxu0 %vm430_vm0, %v4350_v3  ;;  %v5901_v15 = vld [vmem:[%s5844_s17 + $0x69] sm:$0xff]  ;;  %v5904_v16 = vld [vmem:[%s5844_s17 + $0x79] sm:$0xff]  ;;  %v5915_v17 = vld [vmem:[%s5844_s17 + $0x81] sm:$0xff]  ;;  %p5649_p12 = scmp.ne.s32.totalorder %s6914_s23, %s5648_s6  ;;  %p5656_p2 = scmp.lt.s32.totalorder %s5654_s9, %s5648_s6 }
  0x21   : > { %4889 = vmatprep.mubr.msk.f32.mxu1 %vm333_vm1, %v4252_v5  ;;  %5089 = vmatprep.mubr.msk.f32.mxu0 %vm333_vm1, %v5853_v8  ;;  %v5918_v18 = vld [vmem:[%s5844_s17 + $0x91] sm:$0xff]  ;;  %v5929_v19 = vld [vmem:[%s5844_s17 + $0x99] sm:$0xff]  ;;  %v5932_v20 = vld [vmem:[%s5844_s17 + $0xa9] sm:$0xff] }
  0x22   : > { %5184 = vmatprep.subr.msk.mxu0 %vm430_vm0, %v4416_v9  ;;  %4984 = vmatprep.subr.msk.mxu1 %vm430_vm0, %v5863_v10  ;;  %v5943_v21 = vld [vmem:[%s5844_s17 + $0xb1] sm:$0xff]  ;;  %v5946_v22 = vld [vmem:[%s5844_s17 + $0xc1] sm:$0xff]  ;;  %v5957_v23 = vld [vmem:[%s5844_s17 + $0xc9] sm:$0xff]  ;;  %p5650_p13 = pnand %p5649_p12, %p5799_p4  ;;  %p5657_p3 = por %p5656_p2, %p5655_p1 }
  0x23   : > { %4890 = vmatmul.mubr.msk.f32.gmra.mrb[2].mxu1 %vm333_vm1, %v4253_v7  ;;  %5090 = vmatmul.mubr.msk.f32.gmra.mrb[2].mxu0 %vm333_vm1, %v5868_v11  ;;  %v5960_v24 = vld [vmem:[%s5844_s17 + $0x1a] sm:$0xff]  ;;  %v5971_v25 = vld [vmem:[%s5844_s17 + $0x22] sm:$0xff]  ;;  %v5977_v27 = vld [vmem:[%s5844_s17 + $0x32] sm:$0xff] }
  0x24   : > { %4892 = vmatprep.mubr.msk.f32.mxu1 %vm333_vm1, %v5853_v8  ;;  %5092 = vmatprep.mubr.msk.f32.mxu0 %vm333_vm1, %v5874_v12  ;;  %v5974_v26 = vld [vmem:[%s5844_s17 + $0xd9] sm:$0xff]  ;;  %v5992_v29 = vld [vmem:[%s5844_s17 + $0xe1] sm:$0xff]  ;;  %v6000_v31 = vld [vmem:[%s5844_s17 + $0xf1] sm:$0xff]  ;;  %p5651_p0 = pneg %p5650_p13 }
  0x25   : > { %7013 = vst [vmem:[#allocation5_spill] sm:$0xff] %v5992_v29  ;;  %v5995_v30 = vld [vmem:[%s5844_s17 + $0x3a] sm:$0xff]  ;;  %7014 = vst [vmem:[#allocation6_spill] sm:$0xff] %v6000_v31  ;;  %v6003_v32 = vld [vmem:[%s5844_s17 + $0x4a] sm:$0xff] }
  0x26   : > { %v6016_v33 = vld [vmem:[%s5844_s17 + $0xf9] sm:$0xff]  ;;  %v6022_v35 = vld [vmem:[%s5844_s17 + $0x109] sm:$0xff]  ;;  %v6036_v37 = vld [vmem:[%s5844_s17 + $0x111] sm:$0xff]  ;;  %p5658_p5 = pnand %p5657_p3, %p5651_p0 }
  0x27   : > { %4893 = vmatmul.mubr.msk.f32.gmra.mrb[4].mxu1 %vm333_vm1, %v5868_v11  ;;  %5093 = vmatmul.mubr.msk.f32.gmra.mrb[4].mxu0 %vm333_vm1, %v5887_v13  ;;  %7015 = vst [vmem:[#allocation7_spill] sm:$0xff] %v6016_v33  ;;  %v6019_v34 = vld [vmem:[%s5844_s17 + $0x52] sm:$0xff]  ;;  %7016 = vst [vmem:[#allocation8_spill] sm:$0xff] %v6022_v35  ;;  %v6025_v36 = vld [vmem:[%s5844_s17 + $0x62] sm:$0xff] }
  0x28   : > { %4895 = vmatprep.mubr.msk.f32.mxu1 %vm333_vm1, %v5874_v12  ;;  %5095 = vmatprep.mubr.msk.f32.mxu0 %vm333_vm1, %v5890_v14  ;;  %7017 = vst [vmem:[#allocation9_spill] sm:$0xff] %v6036_v37  ;;  %v6039_v38 = vld [vmem:[%s5844_s17 + $0x6a] sm:$0xff]  ;;  %v6042_v39 = vld [vmem:[%s5844_s17 + $0x121] sm:$0xff]  ;;  %v6062_v43 = vld [vmem:[%s5844_s17 + $0x139] sm:$0xff] }
  0x29   : > { %7018 = vst [vmem:[#allocation10_spill] sm:$0xff] %v6042_v39  ;;  %v6045_v40 = vld [vmem:[%s5844_s17 + $0x7a] sm:$0xff]  ;;  %v6056_v41 = vld [vmem:[%s5844_s17 + $0x129] sm:$0xff]  ;;  %7020 = vst [vmem:[#allocation12_spill] sm:$0xff] %v6062_v43 }
  0x2a   : > { %7019 = vst [vmem:[#allocation11_spill] sm:$0xff] %v6056_v41  ;;  %v6059_v42 = vld [vmem:[%s5844_s17 + $0x82] sm:$0xff]  ;;  %v6065_v44 = vld [vmem:[%s5844_s17 + $0x92] sm:$0xff]  ;;  %v6079_v46 = vld [vmem:[%s5844_s17 + $0x9a] sm:$0xff] }
  0x2b   : > { %4896 = vmatmul.mubr.msk.f32.gmra.mrb[6].mxu1 %vm333_vm1, %v5887_v13  ;;  %5096 = vmatmul.mubr.msk.f32.gmra.mrb[6].mxu0 %vm333_vm1, %v5901_v15  ;;  %v6076_v45 = vld [vmem:[%s5844_s17 + $0x141] sm:$0xff]  ;;  %v6082_v47 = vld [vmem:[%s5844_s17 + $0x151] sm:$0xff]  ;;  %v6096_v49 = vld [vmem:[%s5844_s17 + $0x159] sm:$0xff] }
  0x2c   : > { %4898 = vmatprep.mubr.msk.f32.mxu1 %vm333_vm1, %v5890_v14  ;;  %5098 = vmatprep.mubr.msk.f32.mxu0 %vm333_vm1, %v5904_v16  ;;  %7021 = vst [vmem:[#allocation13_spill] sm:$0xff] %v6076_v45  ;;  %7022 = vst [vmem:[#allocation14_spill] sm:$0xff] %v6082_v47  ;;  %v6085_v48 = vld [vmem:[%s5844_s17 + $0xaa] sm:$0xff]  ;;  %v6099_v50 = vld [vmem:[%s5844_s17 + $0xb2] sm:$0xff] }
  0x2d   : > { %7023 = vst [vmem:[#allocation15_spill] sm:$0xff] %v6096_v49  ;;  %v6102_v51 = vld [vmem:[%s5844_s17 + $0x169] sm:$0xff]  ;;  %v6116_v53 = vld [vmem:[%s5844_s17 + $0x171] sm:$0xff]  ;;  %v266_v55 = vld [vmem:[%s5844_s17] sm:$0xff] }
  0x2e   : > { %7024 = vst [vmem:[#allocation16_spill] sm:$0xff] %v6102_v51  ;;  %v6105_v52 = vld [vmem:[%s5844_s17 + $0xc2] sm:$0xff]  ;;  %7025 = vst [vmem:[#allocation17_spill] sm:$0xff] %v6116_v53  ;;  %v6119_v54 = vld [vmem:[%s5844_s17 + $0xca] sm:$0xff] }
  0x2f   : > { %4899 = vmatmul.mubr.msk.f32.gmra.mrb[8].mxu1 %vm333_vm1, %v5901_v15  ;;  %5099 = vmatmul.mubr.msk.f32.gmra.mrb[8].mxu0 %vm333_vm1, %v5915_v17  ;;  %v6123_v56 = vld [vmem:[%s5844_s17 + $0xda] sm:$0xff]  ;;  %v267_v57 = vld [vmem:[%s5844_s17 + $0x8] sm:$0xff]  ;;  %v6140_v60 = vld [vmem:[%s5844_s17 + $0xf2] sm:$0xff] }
  0x30   : > { %4901 = vmatprep.mubr.msk.f32.mxu1 %vm333_vm1, %v5904_v16  ;;  %5101 = vmatprep.mubr.msk.f32.mxu0 %vm333_vm1, %v5918_v18  ;;  %v6134_v58 = vld [vmem:[%s5844_s17 + $0xe2] sm:$0xff]  ;;  %v6137_v59 = vld [vmem:[%s5844_s17 + $0x18] sm:$0xff]  ;;  %v6163_v0 = vld [vmem:[%s5844_s17 + $0x30] sm:$0xff] }
  0x31   : > { %7026 = vst [vmem:[#allocation18_spill] sm:$0xff] %v6137_v59  ;;  %v6155_v62 = vld [vmem:[%s5844_s17 + $0x20] sm:$0xff]  ;;  %7028 = vst [vmem:[#allocation20_spill] sm:$0xff] %v6163_v0  ;;  %v6166_v2 = vld [vmem:[%s5844_s17 + $0x10a] sm:$0xff] }
  0x32   : > { %7027 = vst [vmem:[#allocation19_spill] sm:$0xff] %v6155_v62  ;;  %v6158_v63 = vld [vmem:[%s5844_s17 + $0xfa] sm:$0xff]  ;;  %v6182_v4 = vld [vmem:[%s5844_s17 + $0x112] sm:$0xff]  ;;  %v6185_v5 = vld [vmem:[%s5844_s17 + $0x48] sm:$0xff] }
  0x33   : > { %4902 = vmatmul.mubr.msk.f32.gmra.mrb[10].mxu1 %vm333_vm1, %v5915_v17  ;;  %5102 = vmatmul.mubr.msk.f32.gmra.mrb[10].mxu0 %vm333_vm1, %v5929_v19  ;;  %v6179_v3 = vld [vmem:[%s5844_s17 + $0x38] sm:$0xff]  ;;  %7030 = vst [vmem:[#allocation22_spill] sm:$0xff] %v6185_v5  ;;  %v6188_v6 = vld [vmem:[%s5844_s17 + $0x122] sm:$0xff]  ;;  %v6199_v7 = vld [vmem:[%s5844_s17 + $0x50] sm:$0xff] }
  0x34   : > { %4904 = vmatprep.mubr.msk.f32.mxu1 %vm333_vm1, %v5918_v18  ;;  %5104 = vmatprep.mubr.msk.f32.mxu0 %vm333_vm1, %v5932_v20  ;;  %7029 = vst [vmem:[#allocation21_spill] sm:$0xff] %v6179_v3  ;;  %7031 = vst [vmem:[#allocation23_spill] sm:$0xff] %v6199_v7 }
  0x37   : > { %4905 = vmatmul.mubr.msk.f32.gmra.mrb[12].mxu1 %vm333_vm1, %v5929_v19  ;;  %5105 = vmatmul.mubr.msk.f32.gmra.mrb[12].mxu0 %vm333_vm1, %v5943_v21 }
  0x38   : > { %4907 = vmatprep.mubr.msk.f32.mxu1 %vm333_vm1, %v5932_v20  ;;  %5107 = vmatprep.mubr.msk.f32.mxu0 %vm333_vm1, %v5946_v22 }
  0x3b   : > { %4908 = vmatmul.mubr.msk.f32.gmra.mrb[14].mxu1 %vm333_vm1, %v5943_v21  ;;  %5108 = vmatmul.mubr.msk.f32.gmra.mrb[14].mxu0 %vm333_vm1, %v5957_v23 }
  0x3c   : > { %4910 = vmatprep.mubr.msk.f32.mxu1 %vm333_vm1, %v5946_v22  ;;  %5136 = vmatprep.mubr.msk.f32.mxu0 %vm333_vm1, %v5960_v24 }
  0x3f   : > { %4911 = vmatmul.mubr.msk.f32.gmra.mrb[16].mxu1 %vm333_vm1, %v5957_v23  ;;  %5137 = vmatmul.mubr.msk.f32.vlgmr.msra.gmra.mrb[0].mxu0 %vm333_vm1, %v5971_v25 }
  0x40   : > { %5185 = vmatpush3.msk.msra.mxu0 %vm430_vm0, %v4416_v9  ;;  %4913 = vmatprep.mubr.msk.f32.mxu1 %vm333_vm1, %v5974_v26  ;;  %v6202_v9 = vld [vmem:[%s5844_s17 + $0x12a] sm:$0xff] }
  0x41   : > { %5139 = vmatprep.mubr.msk.f32.mxu0 %vm333_vm1, %v5977_v27  ;;  %5234 = vmatprep.subr.msk.mxu0 %vm430_vm0, %v5982_v28 }
  0x43   : > { %4914 = vmatmul.mubr.msk.f32.gmra.mrb[18].mxu1 %vm333_vm1, %v5992_v29  ;;  %5140 = vmatmul.mubr.msk.f32.gmra.mrb[2].mxu0 %vm333_vm1, %v5995_v30  ;;  %v6299_v29 = vld [vmem:[%s5844_s17 + $0xd8] sm:$0xff] }
  0x44   : > { %4916 = vmatprep.mubr.msk.f32.mxu1 %vm333_vm1, %v6000_v31  ;;  %5142 = vmatprep.mubr.msk.f32.mxu0 %vm333_vm1, %v6003_v32  ;;  %v6282_v31 = vld [vmem:[%s5844_s17 + $0x18a] sm:$0xff] }
  0x45   : > { %7042 = vst [vmem:[#allocation34_spill] sm:$0xff] %v6282_v31 }
  0x47   : > { %4917 = vmatmul.mubr.msk.f32.gmra.mrb[20].mxu1 %vm333_vm1, %v6016_v33  ;;  %5143 = vmatmul.mubr.msk.f32.gmra.mrb[4].mxu0 %vm333_vm1, %v6019_v34  ;;  %v6268_v33 = vld [vmem:[%s5844_s17 + $0x182] sm:$0xff] }
  0x48   : > { %4919 = vmatprep.mubr.msk.f32.mxu1 %vm333_vm1, %v6022_v35  ;;  %5145 = vmatprep.mubr.msk.f32.mxu0 %vm333_vm1, %v6025_v36  ;;  %v6265_v35 = vld [vmem:[%s5844_s17 + $0xa8] sm:$0xff]  ;;  %7040 = vst [vmem:[#allocation32_spill] sm:$0xff] %v6268_v33 }
  0x49   : > { %7039 = vst [vmem:[#allocation31_spill] sm:$0xff] %v6265_v35 }
  0x4b   : > { %4920 = vmatmul.mubr.msk.f32.gmra.mrb[22].mxu1 %vm333_vm1, %v6036_v37  ;;  %5146 = vmatmul.mubr.msk.f32.gmra.mrb[6].mxu0 %vm333_vm1, %v6039_v38  ;;  %v6262_v37 = vld [vmem:[%s5844_s17 + $0x172] sm:$0xff] }
  0x4c   : > { %4922 = vmatprep.mubr.msk.f32.mxu1 %vm333_vm1, %v6042_v39  ;;  %5148 = vmatprep.mubr.msk.f32.mxu0 %vm333_vm1, %v6045_v40  ;;  %v6259_v39 = vld [vmem:[%s5844_s17 + $0x98] sm:$0xff]  ;;  %7038 = vst [vmem:[#allocation30_spill] sm:$0xff] %v6262_v37 }
  0x4d   : > { %7037 = vst [vmem:[#allocation29_spill] sm:$0xff] %v6259_v39 }
  0x4f   : > { %4923 = vmatmul.mubr.msk.f32.gmra.mrb[24].mxu1 %vm333_vm1, %v6056_v41  ;;  %5149 = vmatmul.mubr.msk.f32.gmra.mrb[8].mxu0 %vm333_vm1, %v6059_v42  ;;  %v6248_v41 = vld [vmem:[%s5844_s17 + $0x16a] sm:$0xff] }
  0x50   : > { %4925 = vmatprep.mubr.msk.f32.mxu1 %vm333_vm1, %v6062_v43  ;;  %5151 = vmatprep.mubr.msk.f32.mxu0 %vm333_vm1, %v6065_v44  ;;  %v6245_v43 = vld [vmem:[%s5844_s17 + $0x90] sm:$0xff] }
  0x51   : > { %7036 = vst [vmem:[#allocation28_spill] sm:$0xff] %v6245_v43 }
  0x53   : > { %4926 = vmatmul.mubr.msk.f32.gmra.mrb[26].mxu1 %vm333_vm1, %v6076_v45  ;;  %5152 = vmatmul.mubr.msk.f32.gmra.mrb[10].mxu0 %vm333_vm1, %v6079_v46  ;;  %v6242_v45 = vld [vmem:[%s5844_s17 + $0x15a] sm:$0xff] }
  0x54   : > { %4928 = vmatprep.mubr.msk.f32.mxu1 %vm333_vm1, %v6082_v47  ;;  %5154 = vmatprep.mubr.msk.f32.mxu0 %vm333_vm1, %v6085_v48  ;;  %v6239_v47 = vld [vmem:[%s5844_s17 + $0x80] sm:$0xff] }
  0x55   : > { %7035 = vst [vmem:[#allocation27_spill] sm:$0xff] %v6239_v47 }
  0x57   : > { %4929 = vmatmul.mubr.msk.f32.gmra.mrb[28].mxu1 %vm333_vm1, %v6096_v49  ;;  %5155 = vmatmul.mubr.msk.f32.gmra.mrb[12].mxu0 %vm333_vm1, %v6099_v50  ;;  %v6228_v49 = vld [vmem:[%s5844_s17 + $0x152] sm:$0xff] }
  0x58   : > { %4931 = vmatprep.mubr.msk.f32.mxu1 %vm333_vm1, %v6102_v51  ;;  %5157 = vmatprep.mubr.msk.f32.mxu0 %vm333_vm1, %v6105_v52  ;;  %v6225_v51 = vld [vmem:[%s5844_s17 + $0x78] sm:$0xff] }
  0x59   : > { %7034 = vst [vmem:[#allocation26_spill] sm:$0xff] %v6225_v51 }
  0x5b   : > { %4932 = vmatmul.mubr.msk.f32.gmra.mrb[30].mxu1 %vm333_vm1, %v6116_v53  ;;  %5158 = vmatmul.mubr.msk.f32.gmra.mrb[14].mxu0 %vm333_vm1, %v6119_v54  ;;  %v6222_v53 = vld [vmem:[%s5844_s17 + $0x142] sm:$0xff] }
  0x5c   : > { %4936 = vmatprep.mubr.msk.f32.mxu1 %vm333_vm1, %v266_v55  ;;  %5160 = vmatprep.mubr.msk.f32.mxu0 %vm333_vm1, %v6123_v56  ;;  %v6208_v55 = vld [vmem:[%s5844_s17 + $0x13a] sm:$0xff] }
  0x5f   : > { %4937 = vmatmul.mubr.msk.f32.vlgmr.msra.gmra.mrb[0].mxu1 %vm333_vm1, %v267_v57  ;;  %5161 = vmatmul.mubr.msk.f32.gmra.mrb[16].mxu0 %vm333_vm1, %v6134_v58  ;;  %v6219_v57 = vld [vmem:[%s5844_s17 + $0x68] sm:$0xff] }
  0x60   : > { %4985 = vmatpush3.msk.msra.mxu1 %vm430_vm0, %v5863_v10  ;;  %4939 = vmatprep.mubr.msk.f32.mxu1 %vm333_vm1, %v6137_v59  ;;  %v6205_v10 = vld [vmem:[%s5844_s17 + $0x60] sm:$0xff]  ;;  %7033 = vst [vmem:[#allocation25_spill] sm:$0xff] %v6219_v57 }
  0x61   : > { %5163 = vmatprep.mubr.msk.f32.mxu0 %vm333_vm1, %v6140_v60  ;;  %5034 = vmatprep.subr.msk.mxu1 %vm430_vm0, %v6145_v61  ;;  %7032 = vst [vmem:[#allocation24_spill] sm:$0xff] %v6205_v10  ;;  %v6285_v59 = vld [vmem:[%s5844_s17 + $0xc0] sm:$0xff] }
  0x63   : > { %4940 = vmatmul.mubr.msk.f32.gmra.mrb[2].mxu1 %vm333_vm1, %v6155_v62  ;;  %5164 = vmatmul.mubr.msk.f32.gmra.mrb[18].mxu0 %vm333_vm1, %v6158_v63  ;;  %v6279_v62 = vld [vmem:[%s5844_s17 + $0xb0] sm:$0xff] }
  0x64   : > { %4942 = vmatprep.mubr.msk.f32.mxu1 %vm333_vm1, %v6163_v0  ;;  %5166 = vmatprep.mubr.msk.f32.mxu0 %vm333_vm1, %v6166_v2  ;;  %7041 = vst [vmem:[#allocation33_spill] sm:$0xff] %v6279_v62 }
  0x67   : > { %4943 = vmatmul.mubr.msk.f32.gmra.mrb[4].mxu1 %vm333_vm1, %v6179_v3  ;;  %5167 = vmatmul.mubr.msk.f32.gmra.mrb[20].mxu0 %vm333_vm1, %v6182_v4 }
  0x68   : > { %4945 = vmatprep.mubr.msk.f32.mxu1 %vm333_vm1, %v6185_v5  ;;  %5169 = vmatprep.mubr.msk.f32.mxu0 %vm333_vm1, %v6188_v6 }
  0x6b   : > { %4946 = vmatmul.mubr.msk.f32.gmra.mrb[6].mxu1 %vm333_vm1, %v6199_v7  ;;  %5170 = vmatmul.mubr.msk.f32.gmra.mrb[22].mxu0 %vm333_vm1, %v6202_v9 }
  0x6c   : > { %4948 = vmatprep.mubr.msk.f32.mxu1 %vm333_vm1, %v6205_v10  ;;  %5172 = vmatprep.mubr.msk.f32.mxu0 %vm333_vm1, %v6208_v55 }
  0x6f   : > { %4949 = vmatmul.mubr.msk.f32.gmra.mrb[8].mxu1 %vm333_vm1, %v6219_v57  ;;  %5173 = vmatmul.mubr.msk.f32.gmra.mrb[24].mxu0 %vm333_vm1, %v6222_v53 }
  0x70   : > { %4951 = vmatprep.mubr.msk.f32.mxu1 %vm333_vm1, %v6225_v51  ;;  %5175 = vmatprep.mubr.msk.f32.mxu0 %vm333_vm1, %v6228_v49 }
  0x73   : > { %4952 = vmatmul.mubr.msk.f32.gmra.mrb[10].mxu1 %vm333_vm1, %v6239_v47  ;;  %5176 = vmatmul.mubr.msk.f32.gmra.mrb[26].mxu0 %vm333_vm1, %v6242_v45 }
  0x74   : > { %4954 = vmatprep.mubr.msk.f32.mxu1 %vm333_vm1, %v6245_v43  ;;  %5178 = vmatprep.mubr.msk.f32.mxu0 %vm333_vm1, %v6248_v41 }
  0x77   : > { %4955 = vmatmul.mubr.msk.f32.gmra.mrb[12].mxu1 %vm333_vm1, %v6259_v39  ;;  %5179 = vmatmul.mubr.msk.f32.gmra.mrb[28].mxu0 %vm333_vm1, %v6262_v37  ;;  %v6304_v37 = vld [vmem:[%s6961_s1 + $0x20] sm:$0xf] }
  0x78   : > { %4957 = vmatprep.mubr.msk.f32.mxu1 %vm333_vm1, %v6265_v35  ;;  %5181 = vmatprep.mubr.msk.f32.mxu0 %vm333_vm1, %v6268_v33  ;;  %v6296_v33 = vld [vmem:[%s5844_s17 + $0xc8] sm:$0xff] }
  0x79   : > { %7043 = vst [vmem:[#allocation35_spill] sm:$0xff] %v6296_v33 }
  0x7b   : > { %4958 = vmatmul.mubr.msk.f32.gmra.mrb[14].mxu1 %vm333_vm1, %v6279_v62  ;;  %5182 = vmatmul.mubr.msk.f32.gmra.mrb[30].mxu0 %vm333_vm1, %v6282_v31  ;;  %v6315_v31 = vld [vmem:[%s5844_s17 + $0xe0] sm:$0xff] }
  0x7c   : > { %4960 = vmatprep.mubr.msk.f32.mxu1 %vm333_vm1, %v6285_v59  ;;  %5186 = vmatprep.mubr.msk.f32.mxu0 %vm333_vm1, %v6163_v0  ;;  %v6320_v0 = vld [vmem:[%s5844_s17 + $0xf0] sm:$0xff] }
  0x7f   : > { %4961 = vmatmul.mubr.msk.f32.gmra.mrb[16].mxu1 %vm333_vm1, %v6296_v33  ;;  %5187 = vmatmul.mubr.msk.f32.vlgmr.msra.gmra.mrb[0].mxu0 %vm333_vm1, %v6179_v3  ;;  %v983_v3 = vld [vmem:[%s5844_s17 + $0x2] sm:$0xff] }
  0x80   : > { %5235 = vmatpush3.msk.msra.mxu0 %vm430_vm0, %v5982_v28  ;;  %4963 = vmatprep.mubr.msk.f32.mxu1 %vm333_vm1, %v6299_v29  ;;  %v6333_v28 = vld [vmem:[%s5844_s17 + $0xf8] sm:$0xff] }
  0x81   : > { %5189 = vmatprep.mubr.msk.f32.mxu0 %vm333_vm1, %v6185_v5  ;;  %5284 = vmatprep.subr.msk.mxu0 %vm430_vm0, %v6304_v37  ;;  %v6336_v5 = vld [vmem:[%s5844_s17 + $0x108] sm:$0xff] }
  0x83   : > { %4964 = vmatmul.mubr.msk.f32.gmra.mrb[18].mxu1 %vm333_vm1, %v6315_v31  ;;  %5190 = vmatmul.mubr.msk.f32.gmra.mrb[2].mxu0 %vm333_vm1, %v6199_v7  ;;  %v6347_v7 = vld [vmem:[%s5844_s17 + $0x110] sm:$0xff] }
  0x84   : > { %4966 = vmatprep.mubr.msk.f32.mxu1 %vm333_vm1, %v6320_v0  ;;  %5192 = vmatprep.mubr.msk.f32.mxu0 %vm333_vm1, %v6205_v10  ;;  %v6350_v10 = vld [vmem:[%s5844_s17 + $0x120] sm:$0xff] }
  0x87   : > { %4967 = vmatmul.mubr.msk.f32.gmra.mrb[20].mxu1 %vm333_vm1, %v6333_v28  ;;  %5193 = vmatmul.mubr.msk.f32.gmra.mrb[4].mxu0 %vm333_vm1, %v6219_v57  ;;  %v6361_v57 = vld [vmem:[%s5844_s17 + $0x128] sm:$0xff] }
  0x88   : > { %4969 = vmatprep.mubr.msk.f32.mxu1 %vm333_vm1, %v6336_v5  ;;  %5195 = vmatprep.mubr.msk.f32.mxu0 %vm333_vm1, %v6225_v51  ;;  %v6364_v51 = vld [vmem:[%s5844_s17 + $0x138] sm:$0xff] }
  0x8b   : > { %4970 = vmatmul.mubr.msk.f32.gmra.mrb[22].mxu1 %vm333_vm1, %v6347_v7  ;;  %5196 = vmatmul.mubr.msk.f32.gmra.mrb[6].mxu0 %vm333_vm1, %v6239_v47  ;;  %v6375_v47 = vld [vmem:[%s5844_s17 + $0x140] sm:$0xff] }
  0x8c   : > { %4972 = vmatprep.mubr.msk.f32.mxu1 %vm333_vm1, %v6350_v10  ;;  %5198 = vmatprep.mubr.msk.f32.mxu0 %vm333_vm1, %v6245_v43  ;;  %v6378_v43 = vld [vmem:[%s5844_s17 + $0x150] sm:$0xff] }
  0x8f   : > { %4973 = vmatmul.mubr.msk.f32.gmra.mrb[24].mxu1 %vm333_vm1, %v6361_v57  ;;  %5199 = vmatmul.mubr.msk.f32.gmra.mrb[8].mxu0 %vm333_vm1, %v6259_v39  ;;  %v6389_v39 = vld [vmem:[%s5844_s17 + $0x158] sm:$0xff] }
  0x90   : > { %4975 = vmatprep.mubr.msk.f32.mxu1 %vm333_vm1, %v6364_v51  ;;  %5201 = vmatprep.mubr.msk.f32.mxu0 %vm333_vm1, %v6265_v35  ;;  %v6392_v35 = vld [vmem:[%s5844_s17 + $0x168] sm:$0xff] }
  0x93   : > { %4976 = vmatmul.mubr.msk.f32.gmra.mrb[26].mxu1 %vm333_vm1, %v6375_v47  ;;  %5202 = vmatmul.mubr.msk.f32.gmra.mrb[10].mxu0 %vm333_vm1, %v6279_v62  ;;  %v6403_v62 = vld [vmem:[%s5844_s17 + $0x170] sm:$0xff] }
  0x94   : > { %4978 = vmatprep.mubr.msk.f32.mxu1 %vm333_vm1, %v6378_v43  ;;  %5204 = vmatprep.mubr.msk.f32.mxu0 %vm333_vm1, %v6285_v59 }
  0x97   : > { %4979 = vmatmul.mubr.msk.f32.gmra.mrb[28].mxu1 %vm333_vm1, %v6389_v39  ;;  %5205 = vmatmul.mubr.msk.f32.gmra.mrb[12].mxu0 %vm333_vm1, %v6296_v33  ;;  %v984_v33 = vld [vmem:[%s5844_s17 + $0xa] sm:$0xff] }
  0x98   : > { %4981 = vmatprep.mubr.msk.f32.mxu1 %vm333_vm1, %v6392_v35  ;;  %5207 = vmatprep.mubr.msk.f32.mxu0 %vm333_vm1, %v6299_v29 }
  0x9b   : > { %4982 = vmatmul.mubr.msk.f32.gmra.mrb[30].mxu1 %vm333_vm1, %v6403_v62  ;;  %5208 = vmatmul.mubr.msk.f32.gmra.mrb[14].mxu0 %vm333_vm1, %v6315_v31 }
  0x9c   : > { %4986 = vmatprep.mubr.msk.f32.mxu1 %vm333_vm1, %v983_v3  ;;  %5210 = vmatprep.mubr.msk.f32.mxu0 %vm333_vm1, %v6320_v0  ;;  %v7060_v3 = vld [vmem:[#allocation25_spill] sm:$0xff] }
  0x9f   : > { %4987 = vmatmul.mubr.msk.f32.vlgmr.msra.gmra.mrb[0].mxu1 %vm333_vm1, %v984_v33  ;;  %5211 = vmatmul.mubr.msk.f32.gmra.mrb[16].mxu0 %vm333_vm1, %v6333_v28  ;;  %v4414_v33 = vld [vmem:[%s5844_s17 + $0x198] sm:$0xff] }
  0xa0   : > { %5035 = vmatpush3.msk.msra.mxu1 %vm430_vm0, %v6145_v61  ;;  %4989 = vmatprep.mubr.msk.f32.mxu1 %vm333_vm1, %v5960_v24  ;;  %v6458_v24 = vld [vmem:[%s5844_s17 + $0x180] sm:$0xff] }
  0xa1   : > { %5213 = vmatprep.mubr.msk.f32.mxu0 %vm333_vm1, %v6336_v5  ;;  %5334 = vmatprep.subr.msk.mxu1 %vm430_vm0, %v5820_v1  ;;  %v4415_v61 = vld [vmem:[%s5844_s17 + $0x1a0] sm:$0xff] }
  0xa3   : > { %4990 = vmatmul.mubr.msk.f32.gmra.mrb[2].mxu1 %vm333_vm1, %v5971_v25  ;;  %5214 = vmatmul.mubr.msk.f32.gmra.mrb[18].mxu0 %vm333_vm1, %v6347_v7  ;;  %v6469_v25 = vld [vmem:[%s5844_s17 + $0x188] sm:$0xff] }
  0xa4   : > { %4992 = vmatprep.mubr.msk.f32.mxu1 %vm333_vm1, %v5977_v27  ;;  %5216 = vmatprep.mubr.msk.f32.mxu0 %vm333_vm1, %v6350_v10 }
  0xa7   : > { %4993 = vmatmul.mubr.msk.f32.gmra.mrb[4].mxu1 %vm333_vm1, %v5995_v30  ;;  %5217 = vmatmul.mubr.msk.f32.gmra.mrb[20].mxu0 %vm333_vm1, %v6361_v57 }
  0xa8   : > { %4995 = vmatprep.mubr.msk.f32.mxu1 %vm333_vm1, %v6003_v32  ;;  %5219 = vmatprep.mubr.msk.f32.mxu0 %vm333_vm1, %v6364_v51 }
  0xab   : > { %4996 = vmatmul.mubr.msk.f32.gmra.mrb[6].mxu1 %vm333_vm1, %v6019_v34  ;;  %5220 = vmatmul.mubr.msk.f32.gmra.mrb[22].mxu0 %vm333_vm1, %v6375_v47 }
  0xac   : > { %4998 = vmatprep.mubr.msk.f32.mxu1 %vm333_vm1, %v6025_v36  ;;  %5222 = vmatprep.mubr.msk.f32.mxu0 %vm333_vm1, %v6378_v43 }
  0xaf   : > { %4999 = vmatmul.mubr.msk.f32.gmra.mrb[8].mxu1 %vm333_vm1, %v6039_v38  ;;  %5223 = vmatmul.mubr.msk.f32.gmra.mrb[24].mxu0 %vm333_vm1, %v6389_v39 }
  0xb0   : > { %5001 = vmatprep.mubr.msk.f32.mxu1 %vm333_vm1, %v6045_v40  ;;  %5225 = vmatprep.mubr.msk.f32.mxu0 %vm333_vm1, %v6392_v35 }
  0xb3   : > { %5002 = vmatmul.mubr.msk.f32.gmra.mrb[10].mxu1 %vm333_vm1, %v6059_v42  ;;  %5226 = vmatmul.mubr.msk.f32.gmra.mrb[26].mxu0 %vm333_vm1, %v6403_v62 }
  0xb4   : > { %5004 = vmatprep.mubr.msk.f32.mxu1 %vm333_vm1, %v6065_v44  ;;  %5228 = vmatprep.mubr.msk.f32.mxu0 %vm333_vm1, %v6458_v24 }
  0xb7   : > { %5005 = vmatmul.mubr.msk.f32.gmra.mrb[12].mxu1 %vm333_vm1, %v6079_v46  ;;  %5229 = vmatmul.mubr.msk.f32.gmra.mrb[28].mxu0 %vm333_vm1, %v6469_v25 }
  0xb8   : > { %5007 = vmatprep.mubr.msk.f32.mxu1 %vm333_vm1, %v6085_v48  ;;  %5231 = vmatprep.mubr.msk.f32.mxu0 %vm333_vm1, %v4414_v33  ;;  %v7061_v33 = vld [vmem:[#allocation13_spill] sm:$0xff] }
  0xbb   : > { %5008 = vmatmul.mubr.msk.f32.gmra.mrb[14].mxu1 %vm333_vm1, %v6099_v50  ;;  %5232 = vmatmul.mubr.msk.f32.gmra.mrb[30].mxu0 %vm333_vm1, %v4415_v61  ;;  %v7062_v61 = vld [vmem:[#allocation26_spill] sm:$0xff] }
  0xbc   : > { %5010 = vmatprep.mubr.msk.f32.mxu1 %vm333_vm1, %v6105_v52  ;;  %5236 = vmatprep.mubr.msk.f32.mxu0 %vm333_vm1, %v5853_v8  ;;  %v7044_v8 = vld [vmem:[#allocation30_spill] sm:$0xff] }
  0xbf   : > { %5011 = vmatmul.mubr.msk.f32.gmra.mrb[16].mxu1 %vm333_vm1, %v6119_v54  ;;  %5237 = vmatmul.mubr.msk.f32.vlgmr.msra.gmra.mrb[0].mxu0 %vm333_vm1, %v5868_v11  ;;  %v7045_v11 = vld [vmem:[#allocation5_spill] sm:$0xff] }
  0xc0   : > { %5285 = vmatpush3.msk.msra.mxu0 %vm430_vm0, %v6304_v37  ;;  %5013 = vmatprep.mubr.msk.f32.mxu1 %vm333_vm1, %v6123_v56  ;;  %v7059_v37 = vld [vmem:[#allocation12_spill] sm:$0xff] }
  0xc1   : > { %5239 = vmatprep.mubr.msk.f32.mxu0 %vm333_vm1, %v5874_v12  ;;  %v7046_v12 = vld [vmem:[#allocation18_spill] sm:$0xff] }
  0xc3   : > { %5014 = vmatmul.mubr.msk.f32.gmra.mrb[18].mxu1 %vm333_vm1, %v6134_v58  ;;  %5240 = vmatmul.mubr.msk.f32.gmra.mrb[2].mxu0 %vm333_vm1, %v5887_v13  ;;  %v7047_v13 = vld [vmem:[#allocation6_spill] sm:$0xff] }
  0xc4   : > { %5016 = vmatprep.mubr.msk.f32.mxu1 %vm333_vm1, %v6140_v60  ;;  %5242 = vmatprep.mubr.msk.f32.mxu0 %vm333_vm1, %v5890_v14  ;;  %v7048_v14 = vld [vmem:[#allocation19_spill] sm:$0xff] }
  0xc7   : > { %5017 = vmatmul.mubr.msk.f32.gmra.mrb[20].mxu1 %vm333_vm1, %v6158_v63  ;;  %5243 = vmatmul.mubr.msk.f32.gmra.mrb[4].mxu0 %vm333_vm1, %v5901_v15  ;;  %v7049_v15 = vld [vmem:[#allocation7_spill] sm:$0xff] }
  0xc8   : > { %5019 = vmatprep.mubr.msk.f32.mxu1 %vm333_vm1, %v6166_v2  ;;  %5245 = vmatprep.mubr.msk.f32.mxu0 %vm333_vm1, %v5904_v16  ;;  %v7050_v16 = vld [vmem:[#allocation20_spill] sm:$0xff] }
  0xcb   : > { %5020 = vmatmul.mubr.msk.f32.gmra.mrb[22].mxu1 %vm333_vm1, %v6182_v4  ;;  %5246 = vmatmul.mubr.msk.f32.gmra.mrb[6].mxu0 %vm333_vm1, %v5915_v17  ;;  %v7051_v17 = vld [vmem:[#allocation8_spill] sm:$0xff] }
  0xcc   : > { %5022 = vmatprep.mubr.msk.f32.mxu1 %vm333_vm1, %v6188_v6  ;;  %5248 = vmatprep.mubr.msk.f32.mxu0 %vm333_vm1, %v5918_v18  ;;  %v7052_v18 = vld [vmem:[#allocation21_spill] sm:$0xff] }
  0xcf   : > { %5023 = vmatmul.mubr.msk.f32.gmra.mrb[24].mxu1 %vm333_vm1, %v6202_v9  ;;  %5249 = vmatmul.mubr.msk.f32.gmra.mrb[8].mxu0 %vm333_vm1, %v5929_v19  ;;  %v7053_v19 = vld [vmem:[#allocation9_spill] sm:$0xff] }
  0xd0   : > { %5025 = vmatprep.mubr.msk.f32.mxu1 %vm333_vm1, %v6208_v55  ;;  %5251 = vmatprep.mubr.msk.f32.mxu0 %vm333_vm1, %v5932_v20  ;;  %v7054_v20 = vld [vmem:[#allocation22_spill] sm:$0xff] }
  0xd3   : > { %5026 = vmatmul.mubr.msk.f32.gmra.mrb[26].mxu1 %vm333_vm1, %v6222_v53  ;;  %5252 = vmatmul.mubr.msk.f32.gmra.mrb[10].mxu0 %vm333_vm1, %v5943_v21  ;;  %v7055_v21 = vld [vmem:[#allocation10_spill] sm:$0xff] }
  0xd4   : > { %5028 = vmatprep.mubr.msk.f32.mxu1 %vm333_vm1, %v6228_v49  ;;  %5254 = vmatprep.mubr.msk.f32.mxu0 %vm333_vm1, %v5946_v22  ;;  %v7057_v22 = vld [vmem:[#allocation11_spill] sm:$0xff] }
  0xd7   : > { %5029 = vmatmul.mubr.msk.f32.gmra.mrb[28].mxu1 %vm333_vm1, %v6242_v45  ;;  %5255 = vmatmul.mubr.msk.f32.gmra.mrb[12].mxu0 %vm333_vm1, %v5957_v23  ;;  %v7058_v23 = vld [vmem:[#allocation24_spill] sm:$0xff] }
  0xd8   : > { %5031 = vmatprep.mubr.msk.f32.mxu1 %vm333_vm1, %v6248_v41  ;;  %5257 = vmatprep.mubr.msk.f32.mxu0 %vm333_vm1, %v5974_v26 }
  0xdb   : > { %5032 = vmatmul.mubr.msk.f32.gmra.mrb[30].mxu1 %vm333_vm1, %v7044_v8  ;;  %5258 = vmatmul.mubr.msk.f32.gmra.mrb[14].mxu0 %vm333_vm1, %v7045_v11  ;;  %v7071_v8 = vld [vmem:[#allocation33_spill] sm:$0xff] }
  0xdc   : > { %5036 = vmatprep.mubr.msk.f32.mxu1 %vm333_vm1, %v7046_v12  ;;  %5260 = vmatprep.mubr.msk.f32.mxu0 %vm333_vm1, %v7047_v13  ;;  %v7063_v12 = vld [vmem:[#allocation14_spill] sm:$0xff] }
  0xdf   : > { %5037 = vmatmul.mubr.msk.f32.vlgmr.msra.gmra.mrb[0].mxu1 %vm333_vm1, %v7048_v14  ;;  %5261 = vmatmul.mubr.msk.f32.gmra.mrb[16].mxu0 %vm333_vm1, %v7049_v15  ;;  %v7064_v14 = vld [vmem:[#allocation27_spill] sm:$0xff] }
  0xe0   : > { %5335 = vmatpush3.msk.msra.mxu1 %vm430_vm0, %v5820_v1  ;;  %5039 = vmatprep.mubr.msk.f32.mxu1 %vm333_vm1, %v7050_v16  ;;  %v7056_v1 = vld [vmem:[#allocation23_spill] sm:$0xff] }
  0xe1   : > { %5263 = vmatprep.mubr.msk.f32.mxu0 %vm333_vm1, %v7051_v17  ;;  %v7065_v16 = vld [vmem:[#allocation15_spill] sm:$0xff] }
  0xe3   : > { %5040 = vmatmul.mubr.msk.f32.gmra.mrb[2].mxu1 %vm333_vm1, %v7052_v18  ;;  %5264 = vmatmul.mubr.msk.f32.gmra.mrb[18].mxu0 %vm333_vm1, %v7053_v19  ;;  %v7066_v18 = vld [vmem:[#allocation28_spill] sm:$0xff] }
  0xe4   : > { %5042 = vmatprep.mubr.msk.f32.mxu1 %vm333_vm1, %v7054_v20  ;;  %5266 = vmatprep.mubr.msk.f32.mxu0 %vm333_vm1, %v7055_v21  ;;  %v7067_v20 = vld [vmem:[#allocation16_spill] sm:$0xff] }
  0xe7   : > { %5043 = vmatmul.mubr.msk.f32.gmra.mrb[4].mxu1 %vm333_vm1, %v7056_v1  ;;  %5267 = vmatmul.mubr.msk.f32.gmra.mrb[20].mxu0 %vm333_vm1, %v7057_v22  ;;  %v6596_v1 = vld [vmem:[%s5844_s17 + $0x181] sm:$0xff] }
  0xe8   : > { %5045 = vmatprep.mubr.msk.f32.mxu1 %vm333_vm1, %v7058_v23  ;;  %5269 = vmatprep.mubr.msk.f32.mxu0 %vm333_vm1, %v7059_v37  ;;  %v7068_v23 = vld [vmem:[#allocation29_spill] sm:$0xff] }
  0xeb   : > { %5046 = vmatmul.mubr.msk.f32.gmra.mrb[6].mxu1 %vm333_vm1, %v7060_v3  ;;  %5270 = vmatmul.mubr.msk.f32.gmra.mrb[22].mxu0 %vm333_vm1, %v7061_v33  ;;  %v7069_v3 = vld [vmem:[#allocation17_spill] sm:$0xff] }
  0xec   : > { %5048 = vmatprep.mubr.msk.f32.mxu1 %vm333_vm1, %v7062_v61  ;;  %5272 = vmatprep.mubr.msk.f32.mxu0 %vm333_vm1, %v7063_v12  ;;  %v7070_v61 = vld [vmem:[#allocation31_spill] sm:$0xff] }
  0xef   : > { %5049 = vmatmul.mubr.msk.f32.gmra.mrb[8].mxu1 %vm333_vm1, %v7064_v14  ;;  %5273 = vmatmul.mubr.msk.f32.gmra.mrb[24].mxu0 %vm333_vm1, %v7065_v16  ;;  %v6607_v14 = vld [vmem:[%s5844_s17 + $0x189] sm:$0xff] }
  0xf0   : > { %5051 = vmatprep.mubr.msk.f32.mxu1 %vm333_vm1, %v7066_v18  ;;  %5275 = vmatprep.mubr.msk.f32.mxu0 %vm333_vm1, %v7067_v20  ;;  %v4480_v18 = vld [vmem:[%s5844_s17 + $0x199] sm:$0xff] }
  0xf3   : > { %5052 = vmatmul.mubr.msk.f32.gmra.mrb[10].mxu1 %vm333_vm1, %v7068_v23  ;;  %5276 = vmatmul.mubr.msk.f32.gmra.mrb[26].mxu0 %vm333_vm1, %v7069_v3  ;;  %v4481_v23 = vld [vmem:[%s5844_s17 + $0x1a1] sm:$0xff] }
  0xf4   : > { %5054 = vmatprep.mubr.msk.f32.mxu1 %vm333_vm1, %v7070_v61  ;;  %5278 = vmatprep.mubr.msk.f32.mxu0 %vm333_vm1, %v6596_v1  ;;  %v7072_v3 = vld [vmem:[#allocation35_spill] sm:$0xff] }
  0xf7   : > { %5055 = vmatmul.mubr.msk.f32.gmra.mrb[12].mxu1 %vm333_vm1, %v7071_v8  ;;  %5279 = vmatmul.mubr.msk.f32.gmra.mrb[28].mxu0 %vm333_vm1, %v6607_v14 }
  0xf8   : > { %5057 = vmatprep.mubr.msk.f32.mxu1 %vm333_vm1, %v6285_v59  ;;  %5281 = vmatprep.mubr.msk.f32.mxu0 %vm333_vm1, %v4480_v18 }
  0xfb   : > { %5058 = vmatmul.mubr.msk.f32.gmra.mrb[14].mxu1 %vm333_vm1, %v7072_v3  ;;  %5282 = vmatmul.mubr.msk.f32.gmra.mrb[30].mxu0 %vm333_vm1, %v4481_v23 }
  0xfc   : > { %5060 = vmatprep.mubr.msk.f32.mxu1 %vm333_vm1, %v6299_v29  ;;  %5286 = vmatprep.mubr.msk.f32.mxu0 %vm333_vm1, %v5977_v27  ;;  %v7074_v27 = vld [vmem:[#allocation32_spill] sm:$0xff]  ;;  %v4546_v29 = vld [vmem:[%s5844_s17 + $0x19a] sm:$0xff] }
  0xff   : > { %5061 = vmatmul.mubr.msk.f32.gmra.mrb[16].mxu1 %vm333_vm1, %v6315_v31  ;;  %5287 = vmatmul.mubr.msk.f32.vlgmr.msra.gmra.mrb[0].mxu0 %vm333_vm1, %v5995_v30  ;;  %v7075_v30 = vld [vmem:[#allocation17_spill] sm:$0xff]  ;;  %v7076_v31 = vld [vmem:[#allocation34_spill] sm:$0xff] }
 0x100   : > { %5063 = vmatprep.mubr.msk.f32.mxu1 %vm333_vm1, %v6320_v0  ;;  %5289 = vmatprep.mubr.msk.f32.mxu0 %vm333_vm1, %v6003_v32  ;;  %v4547_v32 = vld [vmem:[%s5844_s17 + $0x1a2] sm:$0xff]  ;;  %s4583_s17 = sshll.u32 %s5718_s21, 7  ;;  %s3938_s21 = scalar_lea.sflag [#allocation3], %s244_s13 }
 0x101   : > { %s6912_s30 = scalar_lea.hbm %s6965_s5, %s4583_s17 }
 0x103   : > { %5064 = vmatmul.mubr.msk.f32.gmra.mrb[18].mxu1 %vm333_vm1, %v6333_v28  ;;  %5290 = vmatmul.mubr.msk.f32.gmra.mrb[2].mxu0 %vm333_vm1, %v6019_v34 }
 0x104   : > { %5066 = vmatprep.mubr.msk.f32.mxu1 %vm333_vm1, %v6336_v5  ;;  %5292 = vmatprep.mubr.msk.f32.mxu0 %vm333_vm1, %v6025_v36 }
 0x107   : > { %5067 = vmatmul.mubr.msk.f32.gmra.mrb[20].mxu1 %vm333_vm1, %v6347_v7  ;;  %5293 = vmatmul.mubr.msk.f32.gmra.mrb[4].mxu0 %vm333_vm1, %v6039_v38 }
 0x108   : > { %5069 = vmatprep.mubr.msk.f32.mxu1 %vm333_vm1, %v6350_v10  ;;  %5295 = vmatprep.mubr.msk.f32.mxu0 %vm333_vm1, %v6045_v40 }
 0x10b   : > { %5070 = vmatmul.mubr.msk.f32.gmra.mrb[22].mxu1 %vm333_vm1, %v6361_v57  ;;  %5296 = vmatmul.mubr.msk.f32.gmra.mrb[6].mxu0 %vm333_vm1, %v6059_v42 }
 0x10c   : > { %5072 = vmatprep.mubr.msk.f32.mxu1 %vm333_vm1, %v6364_v51  ;;  %5298 = vmatprep.mubr.msk.f32.mxu0 %vm333_vm1, %v6065_v44 }
 0x10f   : > { %5073 = vmatmul.mubr.msk.f32.gmra.mrb[24].mxu1 %vm333_vm1, %v6375_v47  ;;  %5299 = vmatmul.mubr.msk.f32.gmra.mrb[8].mxu0 %vm333_vm1, %v6079_v46 }
 0x110   : > { %5075 = vmatprep.mubr.msk.f32.mxu1 %vm333_vm1, %v6378_v43  ;;  %5301 = vmatprep.mubr.msk.f32.mxu0 %vm333_vm1, %v6085_v48 }
 0x113   : > { %5076 = vmatmul.mubr.msk.f32.gmra.mrb[26].mxu1 %vm333_vm1, %v6389_v39  ;;  %5302 = vmatmul.mubr.msk.f32.gmra.mrb[10].mxu0 %vm333_vm1, %v6099_v50 }
 0x114   : > { %5078 = vmatprep.mubr.msk.f32.mxu1 %vm333_vm1, %v6392_v35  ;;  %5304 = vmatprep.mubr.msk.f32.mxu0 %vm333_vm1, %v6105_v52 }
 0x117   : > { %5079 = vmatmul.mubr.msk.f32.gmra.mrb[28].mxu1 %vm333_vm1, %v6403_v62  ;;  %5305 = vmatmul.mubr.msk.f32.gmra.mrb[12].mxu0 %vm333_vm1, %v6119_v54 }
 0x118   : > { %5081 = vmatprep.mubr.msk.f32.mxu1 %vm333_vm1, %v6458_v24  ;;  %5307 = vmatprep.mubr.msk.f32.mxu0 %vm333_vm1, %v6123_v56 }
 0x11b   : > { %5082 = vmatmul.mubr.msk.f32.gmra.mrb[30].mxu1 %vm333_vm1, %v6469_v25  ;;  %5308 = vmatmul.mubr.msk.f32.gmra.mrb[14].mxu0 %vm333_vm1, %v6134_v58 }
 0x11c   : > { %5110 = vmatprep.mubr.msk.f32.mxu1 %vm333_vm1, %v5974_v26  ;;  %5310 = vmatprep.mubr.msk.f32.mxu0 %vm333_vm1, %v6140_v60  ;;  %v7073_v26 = vld [vmem:[#allocation30_spill] sm:$0xff] }
 0x11f   : > { %5111 = vmatmul.mubr.msk.f32.vlgmr.msra.gmra.mrb[16].mxu1 %vm333_vm1, %v7045_v11  ;;  %5311 = vmatmul.mubr.msk.f32.gmra.mrb[16].mxu0 %vm333_vm1, %v6158_v63 }
 0x120   : > { %5113 = vmatprep.mubr.msk.f32.mxu1 %vm333_vm1, %v7047_v13  ;;  %5313 = vmatprep.mubr.msk.f32.mxu0 %vm333_vm1, %v6166_v2 }
 0x123   : > { %5114 = vmatmul.mubr.msk.f32.gmra.mrb[18].mxu1 %vm333_vm1, %v7049_v15  ;;  %5314 = vmatmul.mubr.msk.f32.gmra.mrb[18].mxu0 %vm333_vm1, %v6182_v4 }
 0x124   : > { %5116 = vmatprep.mubr.msk.f32.mxu1 %vm333_vm1, %v7051_v17  ;;  %5316 = vmatprep.mubr.msk.f32.mxu0 %vm333_vm1, %v6188_v6 }
 0x127   : > { %5117 = vmatmul.mubr.msk.f32.gmra.mrb[20].mxu1 %vm333_vm1, %v7053_v19  ;;  %5317 = vmatmul.mubr.msk.f32.gmra.mrb[20].mxu0 %vm333_vm1, %v6202_v9 }
 0x128   : > { %5119 = vmatprep.mubr.msk.f32.mxu1 %vm333_vm1, %v7055_v21  ;;  %5319 = vmatprep.mubr.msk.f32.mxu0 %vm333_vm1, %v6208_v55 }
 0x12b   : > { %5120 = vmatmul.mubr.msk.f32.gmra.mrb[22].mxu1 %vm333_vm1, %v7057_v22  ;;  %5320 = vmatmul.mubr.msk.f32.gmra.mrb[22].mxu0 %vm333_vm1, %v6222_v53 }
 0x12c   : > { %5122 = vmatprep.mubr.msk.f32.mxu1 %vm333_vm1, %v7059_v37  ;;  %5322 = vmatprep.mubr.msk.f32.mxu0 %vm333_vm1, %v6228_v49 }
 0x12f   : > { %5123 = vmatmul.mubr.msk.f32.gmra.mrb[24].mxu1 %vm333_vm1, %v7061_v33  ;;  %5323 = vmatmul.mubr.msk.f32.gmra.mrb[24].mxu0 %vm333_vm1, %v6242_v45 }
 0x130   : > { %5125 = vmatprep.mubr.msk.f32.mxu1 %vm333_vm1, %v7063_v12  ;;  %5325 = vmatprep.mubr.msk.f32.mxu0 %vm333_vm1, %v6248_v41 }
 0x133   : > { %5126 = vmatmul.mubr.msk.f32.gmra.mrb[26].mxu1 %vm333_vm1, %v7065_v16  ;;  %5326 = vmatmul.mubr.msk.f32.gmra.mrb[26].mxu0 %vm333_vm1, %v7073_v26 }
 0x134   : > { %5128 = vmatprep.mubr.msk.f32.mxu1 %vm333_vm1, %v7067_v20  ;;  %5328 = vmatprep.mubr.msk.f32.mxu0 %vm333_vm1, %v7074_v27 }
 0x137   : > { %5129 = vmatmul.mubr.msk.f32.gmra.mrb[28].mxu1 %vm333_vm1, %v7075_v30  ;;  %5329 = vmatmul.mubr.msk.f32.gmra.mrb[28].mxu0 %vm333_vm1, %v7076_v31 }
 0x138   : > { %5131 = vmatprep.mubr.msk.f32.mxu1 %vm333_vm1, %v6596_v1  ;;  %5331 = vmatprep.mubr.msk.f32.mxu0 %vm333_vm1, %v4546_v29 }
 0x13b   : > { %5132 = vmatmul.mubr.msk.f32.gmra.mrb[30].mxu1 %vm333_vm1, %v6607_v14  ;;  %5332 = vmatmul.mubr.msk.f32.gmra.mrb[30].mxu0 %vm333_vm1, %v4547_v32 }
 0x1b2   : > { %v5038_v34 = vpop.f32.mrb[0].mxu1 }
 0x1b3   : > { %v1575_v35 = vpop.f32.mrb[1].mxu1 }
 0x1b6   : > { %v5041_v36 = vpop.f32.mrb[2].mxu1 }
 0x1b7   : > { %v1585_v38 = vpop.f32.mrb[3].mxu1 }
 0x1ba   : > { %v5044_v39 = vpop.f32.mrb[4].mxu1 }
 0x1bb   : > { %v1595_v40 = vpop.f32.mrb[5].mxu1 }
 0x1be   : > { %v5047_v41 = vpop.f32.mrb[6].mxu1 }
 0x1bf   : > { %v1605_v42 = vpop.f32.mrb[7].mxu1 }
 0x1c2   : > { %v6749_v43 = vpop.f32.mrb[8].mxu1 }
 0x1c3   : > { %v6751_v44 = vpop.f32.mrb[9].mxu1 }
 0x1c6   : > { %v6753_v45 = vpop.f32.mrb[10].mxu1 }
 0x1c7   : > { %v6755_v46 = vpop.f32.mrb[11].mxu1 }
 0x1ca   : > { %v6757_v47 = vpop.f32.mrb[12].mxu1 }
 0x1cb   : > { %v6759_v48 = vpop.f32.mrb[13].mxu1 }
 0x1ce   : > { %v6761_v49 = vpop.f32.mrb[14].mxu1 }
 0x1cf   : > { %v6763_v50 = vpop.f32.mrb[15].mxu1 }
 0x1d2   : > { %v5288_v51 = vpop.f32.mrb[0].mxu0 }
 0x1d3   : > { %v5336_v52 = vadd.f32 %v5288_v51, %v5038_v34  ;;  %v3528_v53 = vpop.f32.mrb[1].mxu0 }
 0x1d4   : > { %v5337_v54 = vadd.f32 %v3528_v53, %v1575_v35 }
 0x1d5   : > { %v3721_v56 = vsel %vm3719_vm2, %v5336_v52, 0.0  ;;  %v3790_v58 = vmul.f32 %v5336_v52, %v5336_v52  ;;  %3896 = vst.msk [vmem:[%s6769_s15 + $0x8] sm:$0xff] %vm3719_vm2, %v5336_v52 }
 0x1d6   : > { %v3720_v59 = vsel %vm3719_vm2, %v5337_v54, 0.0  ;;  %v3789_v60 = vmul.f32 %v5337_v54, %v5337_v54  ;;  %3895 = vst.msk [vmem:[%s6769_s15] sm:$0xff] %vm3719_vm2, %v5337_v54  ;;  %v5291_v62 = vpop.f32.mrb[2].mxu0 }
 0x1d7   : > { %v3822_v63 = vsel %vm3719_vm2, %v3790_v58, 0.0  ;;  %v3722_v0 = vadd.f32 %v3721_v56, %v3720_v59  ;;  %v5338_v2 = vadd.f32 %v5291_v62, %v5041_v36  ;;  %v3538_v4 = vpop.f32.mrb[3].mxu0 }
 0x1d8   : > { %v3821_v5 = vsel %vm3719_vm2, %v3789_v60, 0.0  ;;  %v5339_v6 = vadd.f32 %v3538_v4, %v1585_v38 }
 0x1d9   : > { %v3823_v7 = vadd.f32 %v3822_v63, %v3821_v5  ;;  %3898 = vst.msk [vmem:[%s6769_s15 + $0x18] sm:$0xff] %vm3719_vm2, %v5338_v2  ;;  %v3792_v9 = vmul.f32 %v5338_v2, %v5338_v2  ;;  %v3725_v8 = vsel %vm3719_vm2, %v5338_v2, 0.0 }
 0x1da   : > { %v3723_v10 = vsel %vm3719_vm2, %v5339_v6, 0.0  ;;  %v3791_v55 = vmul.f32 %v5339_v6, %v5339_v6  ;;  %3897 = vst.msk [vmem:[%s6769_s15 + $0x10] sm:$0xff] %vm3719_vm2, %v5339_v6  ;;  %v5294_v57 = vpop.f32.mrb[4].mxu0 }
 0x1db   : > { %v3724_v28 = vadd.f32 %v3723_v10, %v3722_v0  ;;  %v5340_v24 = vadd.f32 %v5294_v57, %v5044_v39  ;;  %v3548_v25 = vpop.f32.mrb[5].mxu0  ;;  %v3826_v19 = vsel %vm3719_vm2, %v3792_v9, 0.0 }
 0x1dc   : > { %v3824_v11 = vsel %vm3719_vm2, %v3791_v55, 0.0  ;;  %v5341_v13 = vadd.f32 %v3548_v25, %v1595_v40 }
 0x1dd   : > { %v3825_v15 = vadd.f32 %v3824_v11, %v3823_v7  ;;  %3900 = vst.msk [vmem:[%s6769_s15 + $0x28] sm:$0xff] %vm3719_vm2, %v5340_v24  ;;  %v3726_v17 = vadd.f32 %v3725_v8, %v3724_v28  ;;  %v3794_v21 = vmul.f32 %v5340_v24, %v5340_v24  ;;  %v3729_v3 = vsel %vm3719_vm2, %v5340_v24, 0.0 }
 0x1de   : > { %v3727_v22 = vsel %vm3719_vm2, %v5341_v13, 0.0  ;;  %v3793_v37 = vmul.f32 %v5341_v13, %v5341_v13  ;;  %3899 = vst.msk [vmem:[%s6769_s15 + $0x20] sm:$0xff] %vm3719_vm2, %v5341_v13  ;;  %v5297_v33 = vpop.f32.mrb[6].mxu0 }
 0x1df   : > { %v3728_v12 = vadd.f32 %v3727_v22, %v3726_v17  ;;  %v3827_v16 = vadd.f32 %v3826_v19, %v3825_v15  ;;  %v5342_v20 = vadd.f32 %v5297_v33, %v5047_v41  ;;  %v3558_v1 = vpop.f32.mrb[7].mxu0  ;;  %v3830_v26 = vsel %vm3719_vm2, %v3794_v21, 0.0 }
 0x1e0   : > { %v3828_v61 = vsel %vm3719_vm2, %v3793_v37, 0.0  ;;  %v5343_v14 = vadd.f32 %v3558_v1, %v1605_v42 }
 0x1e1   : > { %v3829_v18 = vadd.f32 %v3828_v61, %v3827_v16  ;;  %3902 = vst.msk [vmem:[%s6769_s15 + $0x38] sm:$0xff] %vm3719_vm2, %v5342_v20  ;;  %v3730_v23 = vadd.f32 %v3729_v3, %v3728_v12  ;;  %v3796_v27 = vmul.f32 %v5342_v20, %v5342_v20  ;;  %v3733_v38 = vsel %vm3719_vm2, %v5342_v20, 0.0 }
 0x1e2   : > { %v3731_v29 = vsel %vm3719_vm2, %v5343_v14, 0.0  ;;  %v3795_v30 = vmul.f32 %v5343_v14, %v5343_v14  ;;  %3901 = vst.msk [vmem:[%s6769_s15 + $0x30] sm:$0xff] %vm3719_vm2, %v5343_v14  ;;  %v5300_v31 = vpop.f32.mrb[8].mxu0 }
 0x1e3   : > { %v3732_v32 = vadd.f32 %v3731_v29, %v3730_v23  ;;  %v3831_v34 = vadd.f32 %v3830_v26, %v3829_v18  ;;  %v5344_v35 = vadd.f32 %v5300_v31, %v6749_v43  ;;  %v3568_v36 = vpop.f32.mrb[9].mxu0  ;;  %v3834_v51 = vsel %vm3719_vm2, %v3796_v27, 0.0 }
 0x1e4   : > { %v3832_v39 = vsel %vm3719_vm2, %v3795_v30, 0.0  ;;  %v5345_v40 = vadd.f32 %v3568_v36, %v6751_v44 }
 0x1e5   : > { %v3833_v41 = vadd.f32 %v3832_v39, %v3831_v34  ;;  %3904 = vst.msk [vmem:[%s6769_s15 + $0x48] sm:$0xff] %vm3719_vm2, %v5344_v35  ;;  %v3734_v42 = vadd.f32 %v3733_v38, %v3732_v32  ;;  %v3798_v52 = vmul.f32 %v5344_v35, %v5344_v35  ;;  %v3737_v60 = vsel %vm3719_vm2, %v5344_v35, 0.0 }
 0x1e6   : > { %v3735_v53 = vsel %vm3719_vm2, %v5345_v40, 0.0  ;;  %v3797_v54 = vmul.f32 %v5345_v40, %v5345_v40  ;;  %3903 = vst.msk [vmem:[%s6769_s15 + $0x40] sm:$0xff] %vm3719_vm2, %v5345_v40  ;;  %v5303_v43 = vpop.f32.mrb[10].mxu0 }
 0x1e7   : > { %v3736_v56 = vadd.f32 %v3735_v53, %v3734_v42  ;;  %v3835_v58 = vadd.f32 %v3834_v51, %v3833_v41  ;;  %v5346_v59 = vadd.f32 %v5303_v43, %v6753_v45  ;;  %v3578_v44 = vpop.f32.mrb[11].mxu0  ;;  %v3838_v4 = vsel %vm3719_vm2, %v3798_v52, 0.0 }
 0x1e8   : > { %v3836_v62 = vsel %vm3719_vm2, %v3797_v54, 0.0  ;;  %v5347_v63 = vadd.f32 %v3578_v44, %v6755_v46 }
 0x1e9   : > { %v3837_v0 = vadd.f32 %v3836_v62, %v3835_v58  ;;  %3906 = vst.msk [vmem:[%s6769_s15 + $0x58] sm:$0xff] %vm3719_vm2, %v5346_v59  ;;  %v3738_v2 = vadd.f32 %v3737_v60, %v3736_v56  ;;  %v3800_v5 = vmul.f32 %v5346_v59, %v5346_v59  ;;  %v3741_v57 = vsel %vm3719_vm2, %v5346_v59, 0.0 }
 0x1ea   : > { %v3739_v6 = vsel %vm3719_vm2, %v5347_v63, 0.0  ;;  %v3799_v7 = vmul.f32 %v5347_v63, %v5347_v63  ;;  %3905 = vst.msk [vmem:[%s6769_s15 + $0x50] sm:$0xff] %vm3719_vm2, %v5347_v63  ;;  %v5306_v45 = vpop.f32.mrb[12].mxu0 }
 0x1eb   : > { %v3740_v9 = vadd.f32 %v3739_v6, %v3738_v2  ;;  %v3839_v10 = vadd.f32 %v3838_v4, %v3837_v0  ;;  %v5348_v55 = vadd.f32 %v5306_v45, %v6757_v47  ;;  %v3588_v46 = vpop.f32.mrb[13].mxu0  ;;  %v3842_v11 = vsel %vm3719_vm2, %v3800_v5, 0.0 }
 0x1ec   : > { %v3840_v28 = vsel %vm3719_vm2, %v3799_v7, 0.0  ;;  %v5349_v24 = vadd.f32 %v3588_v46, %v6759_v48 }
 0x1ed   : > { %v3841_v25 = vadd.f32 %v3840_v28, %v3839_v10  ;;  %3908 = vst.msk [vmem:[%s6769_s15 + $0x68] sm:$0xff] %vm3719_vm2, %v5348_v55  ;;  %v3742_v8 = vadd.f32 %v3741_v57, %v3740_v9  ;;  %v3802_v13 = vmul.f32 %v5348_v55, %v5348_v55  ;;  %v3745_v37 = vsel %vm3719_vm2, %v5348_v55, 0.0 }
 0x1ee   : > { %v3743_v15 = vsel %vm3719_vm2, %v5349_v24, 0.0  ;;  %v3801_v17 = vmul.f32 %v5349_v24, %v5349_v24  ;;  %3907 = vst.msk [vmem:[%s6769_s15 + $0x60] sm:$0xff] %vm3719_vm2, %v5349_v24  ;;  %v5309_v47 = vpop.f32.mrb[14].mxu0 }
 0x1ef   : > { %v3744_v19 = vadd.f32 %v3743_v15, %v3742_v8  ;;  %v3843_v21 = vadd.f32 %v3842_v11, %v3841_v25  ;;  %v5350_v22 = vadd.f32 %v5309_v47, %v6761_v49  ;;  %v3598_v48 = vpop.f32.mrb[15].mxu0  ;;  %v3846_v1 = vsel %vm3719_vm2, %v3802_v13, 0.0 }
 0x1f0   : > { %v3844_v33 = vsel %vm3719_vm2, %v3801_v17, 0.0  ;;  %v5351_v12 = vadd.f32 %v3598_v48, %v6763_v50 }
 0x1f1   : > { %v3845_v16 = vadd.f32 %v3844_v33, %v3843_v21  ;;  %3910 = vst.msk [vmem:[%s6769_s15 + $0x78] sm:$0xff] %vm3719_vm2, %v5350_v22  ;;  %v3746_v20 = vadd.f32 %v3745_v37, %v3744_v19  ;;  %v3804_v3 = vmul.f32 %v5350_v22, %v5350_v22  ;;  %v3749_v30 = vsel %vm3719_vm2, %v5350_v22, 0.0 }
 0x1f2   : > { %v3747_v61 = vsel %vm3719_vm2, %v5351_v12, 0.0  ;;  %v3803_v14 = vmul.f32 %v5351_v12, %v5351_v12  ;;  %3909 = vst.msk [vmem:[%s6769_s15 + $0x70] sm:$0xff] %vm3719_vm2, %v5351_v12  ;;  %v5112_v49 = vpop.f32.mrb[16].mxu1  ;;  %v5312_v18 = vpop.f32.mrb[16].mxu0 }
 0x1f3   : > { %v3748_v23 = vadd.f32 %v3747_v61, %v3746_v20  ;;  %v3847_v26 = vadd.f32 %v3846_v1, %v3845_v16  ;;  %v5352_v27 = vadd.f32 %v5312_v18, %v5112_v49  ;;  %v2045_v50 = vpop.f32.mrb[17].mxu1  ;;  %v3608_v29 = vpop.f32.mrb[17].mxu0  ;;  %v3850_v36 = vsel %vm3719_vm2, %v3804_v3, 0.0 }
 0x1f4   : > { %v3848_v31 = vsel %vm3719_vm2, %v3803_v14, 0.0  ;;  %v5353_v32 = vadd.f32 %v3608_v29, %v2045_v50 }
 0x1f5   : > { %v3849_v34 = vadd.f32 %v3848_v31, %v3847_v26  ;;  %3912 = vst.msk [vmem:[%s6769_s15 + $0x88] sm:$0xff] %vm3719_vm2, %v5352_v27  ;;  %v3750_v35 = vadd.f32 %v3749_v30, %v3748_v23  ;;  %v3806_v38 = vmul.f32 %v5352_v27, %v5352_v27  ;;  %v3753_v56 = vsel %vm3719_vm2, %v5352_v27, 0.0 }
 0x1f6   : > { %v3751_v39 = vsel %vm3719_vm2, %v5353_v32, 0.0  ;;  %v3805_v40 = vmul.f32 %v5353_v32, %v5353_v32  ;;  %3911 = vst.msk [vmem:[%s6769_s15 + $0x80] sm:$0xff] %vm3719_vm2, %v5353_v32  ;;  %v5115_v41 = vpop.f32.mrb[18].mxu1  ;;  %v5315_v42 = vpop.f32.mrb[18].mxu0 }
 0x1f7   : > { %v3752_v51 = vadd.f32 %v3751_v39, %v3750_v35  ;;  %v3851_v52 = vadd.f32 %v3850_v36, %v3849_v34  ;;  %v5354_v53 = vadd.f32 %v5315_v42, %v5115_v41  ;;  %v2055_v54 = vpop.f32.mrb[19].mxu1  ;;  %v3618_v43 = vpop.f32.mrb[19].mxu0  ;;  %v3854_v62 = vsel %vm3719_vm2, %v3806_v38, 0.0 }
 0x1f8   : > { %v3852_v58 = vsel %vm3719_vm2, %v3805_v40, 0.0  ;;  %v5355_v59 = vadd.f32 %v3618_v43, %v2055_v54 }
 0x1f9   : > { %v3853_v44 = vadd.f32 %v3852_v58, %v3851_v52  ;;  %3914 = vst.msk [vmem:[%s6769_s15 + $0x98] sm:$0xff] %vm3719_vm2, %v5354_v53  ;;  %v3754_v60 = vadd.f32 %v3753_v56, %v3752_v51  ;;  %v3808_v63 = vmul.f32 %v5354_v53, %v5354_v53  ;;  %v3757_v55 = vsel %vm3719_vm2, %v5354_v53, 0.0 }
 0x1fa   : > { %v3755_v0 = vsel %vm3719_vm2, %v5355_v59, 0.0  ;;  %v3807_v2 = vmul.f32 %v5355_v59, %v5355_v59  ;;  %3913 = vst.msk [vmem:[%s6769_s15 + $0x90] sm:$0xff] %vm3719_vm2, %v5355_v59  ;;  %v5118_v4 = vpop.f32.mrb[20].mxu1  ;;  %v5318_v5 = vpop.f32.mrb[20].mxu0 }
 0x1fb   : > { %v3756_v6 = vadd.f32 %v3755_v0, %v3754_v60  ;;  %v3855_v7 = vadd.f32 %v3854_v62, %v3853_v44  ;;  %v5356_v45 = vadd.f32 %v5318_v5, %v5118_v4  ;;  %v2065_v9 = vpop.f32.mrb[21].mxu1  ;;  %v3628_v10 = vpop.f32.mrb[21].mxu0  ;;  %v3858_v25 = vsel %vm3719_vm2, %v3808_v63, 0.0 }
 0x1fc   : > { %v3856_v46 = vsel %vm3719_vm2, %v3807_v2, 0.0  ;;  %v5357_v57 = vadd.f32 %v3628_v10, %v2065_v9 }
 0x1fd   : > { %v3857_v28 = vadd.f32 %v3856_v46, %v3855_v7  ;;  %3916 = vst.msk [vmem:[%s6769_s15 + $0xa8] sm:$0xff] %vm3719_vm2, %v5356_v45  ;;  %v3758_v24 = vadd.f32 %v3757_v55, %v3756_v6  ;;  %v3810_v8 = vmul.f32 %v5356_v45, %v5356_v45  ;;  %v3761_v37 = vsel %vm3719_vm2, %v5356_v45, 0.0 }
 0x1fe   : > { %v3759_v11 = vsel %vm3719_vm2, %v5357_v57, 0.0  ;;  %v3809_v13 = vmul.f32 %v5357_v57, %v5357_v57  ;;  %3915 = vst.msk [vmem:[%s6769_s15 + $0xa0] sm:$0xff] %vm3719_vm2, %v5357_v57  ;;  %v5121_v15 = vpop.f32.mrb[22].mxu1  ;;  %v5321_v17 = vpop.f32.mrb[22].mxu0 }
 0x1ff   : > { %v3760_v47 = vadd.f32 %v3759_v11, %v3758_v24  ;;  %v3859_v19 = vadd.f32 %v3858_v25, %v3857_v28  ;;  %v5358_v21 = vadd.f32 %v5321_v17, %v5121_v15  ;;  %v2075_v22 = vpop.f32.mrb[23].mxu1  ;;  %v3638_v48 = vpop.f32.mrb[23].mxu0  ;;  %v3862_v1 = vsel %vm3719_vm2, %v3810_v8, 0.0 }
 0x200   : > { %v3860_v33 = vsel %vm3719_vm2, %v3809_v13, 0.0  ;;  %v5359_v12 = vadd.f32 %v3638_v48, %v2075_v22 }
 0x201   : > { %v3861_v16 = vadd.f32 %v3860_v33, %v3859_v19  ;;  %3918 = vst.msk [vmem:[%s6769_s15 + $0xb8] sm:$0xff] %vm3719_vm2, %v5358_v21  ;;  %v3762_v20 = vadd.f32 %v3761_v37, %v3760_v47  ;;  %v3812_v3 = vmul.f32 %v5358_v21, %v5358_v21  ;;  %v3765_v30 = vsel %vm3719_vm2, %v5358_v21, 0.0 }
 0x202   : > { %v3763_v61 = vsel %vm3719_vm2, %v5359_v12, 0.0  ;;  %v3811_v14 = vmul.f32 %v5359_v12, %v5359_v12  ;;  %3917 = vst.msk [vmem:[%s6769_s15 + $0xb0] sm:$0xff] %vm3719_vm2, %v5359_v12  ;;  %v5124_v49 = vpop.f32.mrb[24].mxu1  ;;  %v5324_v18 = vpop.f32.mrb[24].mxu0 }
 0x203   : > { %v3764_v23 = vadd.f32 %v3763_v61, %v3762_v20  ;;  %v3863_v26 = vadd.f32 %v3862_v1, %v3861_v16  ;;  %v5360_v27 = vadd.f32 %v5324_v18, %v5124_v49  ;;  %v2085_v50 = vpop.f32.mrb[25].mxu1  ;;  %v3648_v29 = vpop.f32.mrb[25].mxu0  ;;  %v3866_v36 = vsel %vm3719_vm2, %v3812_v3, 0.0 }
 0x204   : > { %v3864_v31 = vsel %vm3719_vm2, %v3811_v14, 0.0  ;;  %v5361_v32 = vadd.f32 %v3648_v29, %v2085_v50 }
 0x205   : > { %v3865_v34 = vadd.f32 %v3864_v31, %v3863_v26  ;;  %3920 = vst.msk [vmem:[%s6769_s15 + $0xc8] sm:$0xff] %vm3719_vm2, %v5360_v27  ;;  %v3766_v35 = vadd.f32 %v3765_v30, %v3764_v23  ;;  %v3814_v38 = vmul.f32 %v5360_v27, %v5360_v27  ;;  %v3769_v56 = vsel %vm3719_vm2, %v5360_v27, 0.0 }
 0x206   : > { %v3767_v39 = vsel %vm3719_vm2, %v5361_v32, 0.0  ;;  %v3813_v40 = vmul.f32 %v5361_v32, %v5361_v32  ;;  %3919 = vst.msk [vmem:[%s6769_s15 + $0xc0] sm:$0xff] %vm3719_vm2, %v5361_v32  ;;  %v5127_v41 = vpop.f32.mrb[26].mxu1  ;;  %v5327_v42 = vpop.f32.mrb[26].mxu0 }
 0x207   : > { %v3768_v51 = vadd.f32 %v3767_v39, %v3766_v35  ;;  %v3867_v52 = vadd.f32 %v3866_v36, %v3865_v34  ;;  %v5362_v53 = vadd.f32 %v5327_v42, %v5127_v41  ;;  %v2095_v54 = vpop.f32.mrb[27].mxu1  ;;  %v3658_v43 = vpop.f32.mrb[27].mxu0  ;;  %v3870_v62 = vsel %vm3719_vm2, %v3814_v38, 0.0 }
 0x208   : > { %v3868_v58 = vsel %vm3719_vm2, %v3813_v40, 0.0  ;;  %v5363_v59 = vadd.f32 %v3658_v43, %v2095_v54 }
 0x209   : > { %v3869_v44 = vadd.f32 %v3868_v58, %v3867_v52  ;;  %3922 = vst.msk [vmem:[%s6769_s15 + $0xd8] sm:$0xff] %vm3719_vm2, %v5362_v53  ;;  %v3770_v60 = vadd.f32 %v3769_v56, %v3768_v51  ;;  %v3816_v63 = vmul.f32 %v5362_v53, %v5362_v53  ;;  %v3773_v55 = vsel %vm3719_vm2, %v5362_v53, 0.0 }
 0x20a   : > { %v3771_v0 = vsel %vm3719_vm2, %v5363_v59, 0.0  ;;  %v3815_v2 = vmul.f32 %v5363_v59, %v5363_v59  ;;  %3921 = vst.msk [vmem:[%s6769_s15 + $0xd0] sm:$0xff] %vm3719_vm2, %v5363_v59  ;;  %v5130_v4 = vpop.f32.mrb[28].mxu1  ;;  %v5330_v5 = vpop.f32.mrb[28].mxu0 }
 0x20b   : > { %v3772_v6 = vadd.f32 %v3771_v0, %v3770_v60  ;;  %v3871_v7 = vadd.f32 %v3870_v62, %v3869_v44  ;;  %v5364_v45 = vadd.f32 %v5330_v5, %v5130_v4  ;;  %v2105_v9 = vpop.f32.mrb[29].mxu1  ;;  %v3668_v10 = vpop.f32.mrb[29].mxu0  ;;  %v3874_v25 = vsel %vm3719_vm2, %v3816_v63, 0.0 }
 0x20c   : > { %v3872_v46 = vsel %vm3719_vm2, %v3815_v2, 0.0  ;;  %v5365_v57 = vadd.f32 %v3668_v10, %v2105_v9 }
 0x20d   : > { %v3873_v28 = vadd.f32 %v3872_v46, %v3871_v7  ;;  %3924 = vst.msk [vmem:[%s6769_s15 + $0xe8] sm:$0xff] %vm3719_vm2, %v5364_v45  ;;  %v3774_v24 = vadd.f32 %v3773_v55, %v3772_v6  ;;  %v3818_v8 = vmul.f32 %v5364_v45, %v5364_v45  ;;  %v3777_v37 = vsel %vm3719_vm2, %v5364_v45, 0.0 }
 0x20e   : > { %v3775_v11 = vsel %vm3719_vm2, %v5365_v57, 0.0  ;;  %v3817_v13 = vmul.f32 %v5365_v57, %v5365_v57  ;;  %3923 = vst.msk [vmem:[%s6769_s15 + $0xe0] sm:$0xff] %vm3719_vm2, %v5365_v57  ;;  %v5133_v15 = vpop.f32.mrb[30].mxu1  ;;  %v5333_v17 = vpop.f32.mrb[30].mxu0 }
 0x20f   : > { %v3776_v47 = vadd.f32 %v3775_v11, %v3774_v24  ;;  %v3875_v19 = vadd.f32 %v3874_v25, %v3873_v28  ;;  %v5366_v21 = vadd.f32 %v5333_v17, %v5133_v15  ;;  %v2115_v22 = vpop.f32.mrb[31].mxu1  ;;  %v3678_v48 = vpop.f32.mrb[31].mxu0  ;;  %v3878_v1 = vsel %vm3719_vm2, %v3818_v8, 0.0 }
 0x210   : > { %v3876_v33 = vsel %vm3719_vm2, %v3817_v13, 0.0  ;;  %v5367_v12 = vadd.f32 %v3678_v48, %v2115_v22 }
 0x211   : > { %v3877_v16 = vadd.f32 %v3876_v33, %v3875_v19  ;;  %3926 = vst.msk [vmem:[%s6769_s15 + $0xf8] sm:$0xff] %vm3719_vm2, %v5366_v21  ;;  %v3778_v20 = vadd.f32 %v3777_v37, %v3776_v47  ;;  %v3820_v3 = vmul.f32 %v5366_v21, %v5366_v21  ;;  %v3781_v23 = vsel %vm3719_vm2, %v5366_v21, 0.0 }
 0x212   : > { %v3779_v61 = vsel %vm3719_vm2, %v5367_v12, 0.0  ;;  %v3819_v14 = vmul.f32 %v5367_v12, %v5367_v12  ;;  %3925 = vst.msk [vmem:[%s6769_s15 + $0xf0] sm:$0xff] %vm3719_vm2, %v5367_v12 }
 0x213   : > { %v3780_v49 = vadd.f32 %v3779_v61, %v3778_v20  ;;  %v3879_v18 = vadd.f32 %v3878_v1, %v3877_v16  ;;  %v3882_v29 = vsel %vm3719_vm2, %v3820_v3, 0.0 }
 0x214   : > { %v3880_v26 = vsel %vm3719_vm2, %v3819_v14, 0.0 }
 0x215   : > { %v3782_v27 = vadd.f32 %v3781_v23, %v3780_v49  ;;  %v3881_v50 = vadd.f32 %v3880_v26, %v3879_v18 }
 0x217   : > { %v3783_v30 = vrot.slane %v3782_v27, 4  ;;  %v3883_v31 = vadd.f32 %v3882_v29, %v3881_v50 }
 0x219   : > { %v3784_v32 = vadd.f32 %v3783_v30, %v3782_v27  ;;  %v3884_v34 = vrot.slane %v3883_v31, 4 }
 0x21b   : > { %v3785_v35 = vrot.slane %v3784_v32, 2  ;;  %v3885_v36 = vadd.f32 %v3884_v34, %v3883_v31 }
 0x21d   : > { %v3786_v38 = vadd.f32 %v3785_v35, %v3784_v32  ;;  %v3886_v39 = vrot.slane %v3885_v36, 2 }
 0x21f   : > { %v3787_v40 = vrot.slane %v3786_v38, 1  ;;  %v3887_v41 = vadd.f32 %v3886_v39, %v3885_v36 }
 0x221   : > { %v3888_v42 = vrot.slane %v3887_v41, 1  ;;  %v3788_v51 = vadd.f32 %v3787_v40, %v3786_v38 }
 0x223   : > { %v3889_v52 = vadd.f32 %v3888_v42, %v3887_v41 }
 0x225   : > { %v3891_v53 = vsel %vm3890_vm3, %v3788_v51, %v3889_v52 }
 0x226   : > { %v3893_v54 = vsel %vm3892_vm4, %v3891_v53, 0.0 }
 0x227   : > { %3894 = vst.msk [vmem:[%s246_s3] sm:$0xff] %vm3719_vm2, %v3893_v54 }
 0x228   : > { %5661 = shalt.err (!%p5658_p5)
}
 0x229   : > { %s5662_s10 = scalar_lea.hbm %s6912_s30, 128  ;;  %s5666_s14 = scalar_lea.hbm %s6965_s5, 256 }
 0x22a   : > { %p5663_p6 = scmp.ne.s32.totalorder %s6912_s30, %s5662_s10  ;;  %p5667_p10 = scmp.lt.u32.totalorder %s6912_s30, %s6965_s5 }
 0x22b   : > { %p5668_p11 = scmp.lt.u32.totalorder %s5666_s14, %s5662_s10  ;;  %p5670_p13 = scmp.lt.u32.totalorder %s5662_s10, %s6912_s30 }
 0x22c   : > { %p5664_p7 = pnand %p5663_p6, %p5799_p4 }
 0x22d   : > { %p5669_p12 = por %p5668_p11, %p5667_p10 }
 0x22e   : > { %p5665_p9 = pneg %p5664_p7 }
 0x22f   : > { %p5671_p0 = por %p5670_p13, %p5669_p12 }
 0x231   : > { %p5672_p1 = pnand %p5671_p0, %p5665_p9 }
 0x233   : > { %5675 = shalt.err (!%p5672_p1)
}
 0x234   : > { %5593 = dma.vmem_to_hbm [thread:$0]  (%p5799_p4), %s6914_s23, 128, %s6912_s30, %s3938_s21  }
 0x235 PF: > { %p5599_p2 = scmp.ge.s32.totalorder %s5726_s22, 2  ;;  %s3981_s16 = sand.u32 1, %s5706_s18  }
 0x236   : > { %s3982_s17 = scalar_lea.sflag [#allocation3], %s3981_s16 }
 0x237   : > { %p5596_p3 = pnand %p5599_p2, %p5806_p8 }
 0x239   : > { %5701 = dma.done.wait (!%p5596_p3), %s3982_s17, 128  }
 0x23a   : > { %5703 = vsyncadd (!%p5596_p3), %s3982_s17, 4294967168  ;;  %s19_s22 = sadd.s32 1, %s5726_s22   ;;  %s7077_s18 = smov %s5710_s19 }
 0x23b   : > { %p16_p5 = scmp.ge.s32.totalorder %s19_s22, 4   ;;  %s7078_s19 = smov %s5714_s20 }
 0x23c   : > { %s7079_s20 = smov %s5812_s29  ;;  %s7080_s21 = smov %s5722_s2 }
 0x23d   : > { %s7081_s2 = smov %s7083_s24  ;;  %18 = sbr.rel (!%p16_p5) target bundleno = 4 (0x4), region = 94 }
 0x244   :  { %3987 = vsyncpa [#allocation3], 1 }
 0x245   :  { %3989 = vsyncpa [#allocation3 + $0x1], 1 }

</bundles_post_ra>
